<compile_context>
chip_gen: v7x
topology: tpu7x:2x2x1
jax: 0.10.0
libtpu: 0.0.40
codegen_flags: <defaults>
</compile_context>

<pallas_src>
import functools

import jax
import jax.numpy as jnp
from jax import lax
from jax.experimental import pallas as pl
from jax.experimental.pallas import tpu as pltpu


def _round_up(x, m):
    return ((x + m - 1) // m) * m


def _conv_relu_kernel(x_ref, w_ref, o_ref, *, ksize, wp, mo):
    """Direct stride-1 conv + ReLU for one batch element.

    x_ref: (1, Rp, Cin)        bf16  -- padded image, flattened to rows (Hp*Wp + halo)
    w_ref: (K*K, Cin, CoutP)   bf16  -- per-tap weight slices
    o_ref: (1, Mo, CoutP)      f32   -- flattened output rows on the (Hout, Wp) grid
    """
    coutp = o_ref.shape[2]
    acc = jnp.zeros((mo, coutp), jnp.float32)
    for idx in range(ksize * ksize):            # static unroll: K*K MXU matmuls
        kh, kw = idx // ksize, idx % ksize
        off = kh * wp + kw                      # row shift for this conv tap
        a = x_ref[0, off:off + mo, :]           # (Mo, Cin) shifted view, bf16
        acc = acc + jnp.dot(a, w_ref[idx], preferred_element_type=jnp.float32)
    o_ref[0] = jnp.maximum(acc, 0.0)            # fused ReLU on the f32 accumulator


def conv_relu_nhwc(x_nhwc, weight, *, pad=1):
    """Conv2d(bias=False, stride=1) + ReLU.  NHWC in / NHWC out."""
    n, h, w, cin = x_nhwc.shape
    cout, cin_w, k, k2 = weight.shape
    assert cin_w == cin and k == k2
    hout = h + 2 * pad - k + 1
    wout = w + 2 * pad - k + 1
    hp, wp = h + 2 * pad, w + 2 * pad

    coutp = _round_up(cout, 128)                    # lane-dense output stores
    mo = _round_up(hout * wp, 8)                    # output rows (on padded-W grid)
    rp = _round_up(mo + (k - 1) * wp + (k - 1), 8)  # input rows incl. shift halo

    # Single-pass prologue: spatial zero-pad, cast bf16, flatten (H,W) -> rows.
    xp = jnp.pad(x_nhwc, ((0, 0), (pad, pad), (pad, pad), (0, 0))).astype(jnp.bfloat16)
    x2d = xp.reshape(n, hp * wp, cin)
    x2d = jnp.pad(x2d, ((0, 0), (0, rp - hp * wp), (0, 0)))

    # Weights: OIHW -> (K*K, Cin, CoutP), bf16.
    wt = jnp.transpose(weight, (2, 3, 1, 0)).reshape(k * k, cin, cout)
    wt = jnp.pad(wt, ((0, 0), (0, 0), (0, coutp - cout))).astype(jnp.bfloat16)

    kernel = functools.partial(_conv_relu_kernel, ksize=k, wp=wp, mo=mo)
    out = pl.pallas_call(
        kernel,
        out_shape=jax.ShapeDtypeStruct((n, mo, coutp), jnp.float32),
        grid_spec=pltpu.PrefetchScalarGridSpec(
            num_scalar_prefetch=0,
            grid=(n,),
            in_specs=[
                pl.BlockSpec((1, rp, cin), lambda i: (i, 0, 0)),
                # Weight block is constant across the grid (index_map -> (0,0,0)).
                pl.BlockSpec((k * k, cin, coutp), lambda i: (0, 0, 0)),
            ],
            out_specs=pl.BlockSpec((1, mo, coutp), lambda i: (i, 0, 0)),
        ),
        compiler_params=pltpu.CompilerParams(
            dimension_semantics=("parallel",),      # batch axis -> both TCs on v7x
        ),
    )(x2d, wt)

    # Crop padded-W columns / padded channels; pure slicing + trivial reshape (NHWC).
    out = out[:, : hout * wp, :cout].reshape(n, hout, wp, cout)[:, :, :wout, :]
    return out


@functools.partial(jax.jit, static_argnames=("stride", "pad"))
def conv_block_forward(x_nchw, weight, *, stride=1, pad=1):
    """PyTorch-convention entry: NCHW input, OIHW weights, NCHW output."""
    if stride != 1:
        # TODO(synk): stride>1 would need a strided row-gather A operand; not needed
        # for this block config (k=3, s=1, p=1).
        raise NotImplementedError("direct-conv kernel implements stride=1 only")
    x_nhwc = jnp.transpose(x_nchw, (0, 2, 3, 1))      # one boundary conversion in
    y = conv_relu_nhwc(x_nhwc, weight, pad=pad)
    return jnp.transpose(y, (0, 3, 1, 2))             # one boundary conversion out


if __name__ == "__main__":
    # Block config: Conv2d(4 -> 8, k=3, s=1, p=1, bias=False) + ReLU
    N, CIN, H, W = 2, 4, 16, 16
    COUT, K, STRIDE, PAD = 8, 3, 1, 1

    key = jax.random.PRNGKey(0)
    kx, kw = jax.random.split(key)
    x = jax.random.normal(kx, (N, CIN, H, W), jnp.float32)
    weight = jax.random.normal(kw, (COUT, CIN, K, K), jnp.float32) * 0.1

    y = conv_block_forward(x, weight, stride=STRIDE, pad=PAD)
    y = jax.block_until_ready(y)

    # Reference: XLA conv + ReLU on the same bf16-rounded operands (the kernel
    # computes exact bf16xbf16 products with f32 accumulation, so this should
    # match to f32-rounding level).
    x_q = x.astype(jnp.bfloat16).astype(jnp.float32)
    w_q = weight.astype(jnp.bfloat16).astype(jnp.float32)
    ref = lax.conv_general_dilated(
        x_q, w_q, (STRIDE, STRIDE), [(PAD, PAD), (PAD, PAD)],
        dimension_numbers=("NCHW", "OIHW", "NCHW"),
        precision=lax.Precision.HIGHEST,
    )
    ref = jnp.maximum(ref, 0.0)
    assert y.shape == ref.shape, (y.shape, ref.shape)
    max_err = float(jnp.max(jnp.abs(y - ref)))
    assert jnp.allclose(y, ref, atol=2e-3, rtol=2e-3), max_err

    print("KERNEL_OK")
</pallas_src>

<mosaic_0001>
module attributes {stable_mosaic.version = 11 : i64} {
  func.func @_conv_relu_kernel(%arg0: i32, %arg1: memref<1x328x4xbf16, #tpu.memory_space<vmem>>, %arg2: memref<9x4x128xbf16, #tpu.memory_space<vmem>>, %arg3: memref<1x288x128xf32, #tpu.memory_space<vmem>>) attributes {dimension_semantics = [#tpu.dimension_semantics<parallel>], iteration_bounds = array<i64: 2>, scalar_prefetch = 0 : i64, scratch_operands = 0 : i64, tpu.core_type = #tpu.core_type<tc>, window_params = [{transform_indices = @transform_0, window_bounds = array<i64: 1, 328, 4>}, {pipeline_mode = #tpu.pipeline_mode<synchronous>, transform_indices = @transform_1, window_bounds = array<i64: 9, 4, 128>}, {transform_indices = @transform_2, window_bounds = array<i64: 1, 288, 128>}]} {
    %cst = arith.constant 0.000000e+00 : f32
    %0 = vector.broadcast %cst : f32 to vector<288x128xf32>
    %c0 = arith.constant 0 : index
    %c0_0 = arith.constant 0 : index
    %c0_1 = arith.constant 0 : index
    %1 = vector.load %arg1[%c0, %c0_0, %c0_1] : memref<1x328x4xbf16, #tpu.memory_space<vmem>>, vector<1x288x4xbf16>
    %2 = vector.shape_cast %1 : vector<1x288x4xbf16> to vector<288x4xbf16>
    %c0_2 = arith.constant 0 : index
    %c0_3 = arith.constant 0 : index
    %c0_4 = arith.constant 0 : index
    %3 = vector.load %arg2[%c0_2, %c0_3, %c0_4] : memref<9x4x128xbf16, #tpu.memory_space<vmem>>, vector<1x4x128xbf16>
    %4 = vector.shape_cast %3 : vector<1x4x128xbf16> to vector<4x128xbf16>
    %cst_5 = arith.constant dense<0.000000e+00> : vector<288x128xf32>
    %5 = tpu.matmul %2, %4, %cst_5 {dimension_numbers = #tpu.dot_dimension_numbers<[1], [0], [0], [1], [0, 0, 1, 1], [], []>} : vector<288x4xbf16>, vector<4x128xbf16>, vector<288x128xf32> -> vector<288x128xf32>
    %6 = arith.addf %0, %5 : vector<288x128xf32>
    %c0_6 = arith.constant 0 : index
    %c1 = arith.constant 1 : index
    %c0_7 = arith.constant 0 : index
    %7 = vector.load %arg1[%c0_6, %c1, %c0_7] : memref<1x328x4xbf16, #tpu.memory_space<vmem>>, vector<1x288x4xbf16>
    %8 = vector.shape_cast %7 : vector<1x288x4xbf16> to vector<288x4xbf16>
    %c1_8 = arith.constant 1 : index
    %c0_9 = arith.constant 0 : index
    %c0_10 = arith.constant 0 : index
    %9 = vector.load %arg2[%c1_8, %c0_9, %c0_10] : memref<9x4x128xbf16, #tpu.memory_space<vmem>>, vector<1x4x128xbf16>
    %10 = vector.shape_cast %9 : vector<1x4x128xbf16> to vector<4x128xbf16>
    %cst_11 = arith.constant dense<0.000000e+00> : vector<288x128xf32>
    %11 = tpu.matmul %8, %10, %cst_11 {dimension_numbers = #tpu.dot_dimension_numbers<[1], [0], [0], [1], [0, 0, 1, 1], [], []>} : vector<288x4xbf16>, vector<4x128xbf16>, vector<288x128xf32> -> vector<288x128xf32>
    %12 = arith.addf %6, %11 : vector<288x128xf32>
    %c0_12 = arith.constant 0 : index
    %c2 = arith.constant 2 : index
    %c0_13 = arith.constant 0 : index
    %13 = vector.load %arg1[%c0_12, %c2, %c0_13] : memref<1x328x4xbf16, #tpu.memory_space<vmem>>, vector<1x288x4xbf16>
    %14 = vector.shape_cast %13 : vector<1x288x4xbf16> to vector<288x4xbf16>
    %c2_14 = arith.constant 2 : index
    %c0_15 = arith.constant 0 : index
    %c0_16 = arith.constant 0 : index
    %15 = vector.load %arg2[%c2_14, %c0_15, %c0_16] : memref<9x4x128xbf16, #tpu.memory_space<vmem>>, vector<1x4x128xbf16>
    %16 = vector.shape_cast %15 : vector<1x4x128xbf16> to vector<4x128xbf16>
    %cst_17 = arith.constant dense<0.000000e+00> : vector<288x128xf32>
    %17 = tpu.matmul %14, %16, %cst_17 {dimension_numbers = #tpu.dot_dimension_numbers<[1], [0], [0], [1], [0, 0, 1, 1], [], []>} : vector<288x4xbf16>, vector<4x128xbf16>, vector<288x128xf32> -> vector<288x128xf32>
    %18 = arith.addf %12, %17 : vector<288x128xf32>
    %c0_18 = arith.constant 0 : index
    %c18 = arith.constant 18 : index
    %c0_19 = arith.constant 0 : index
    %19 = vector.load %arg1[%c0_18, %c18, %c0_19] : memref<1x328x4xbf16, #tpu.memory_space<vmem>>, vector<1x288x4xbf16>
    %20 = vector.shape_cast %19 : vector<1x288x4xbf16> to vector<288x4xbf16>
    %c3 = arith.constant 3 : index
    %c0_20 = arith.constant 0 : index
    %c0_21 = arith.constant 0 : index
    %21 = vector.load %arg2[%c3, %c0_20, %c0_21] : memref<9x4x128xbf16, #tpu.memory_space<vmem>>, vector<1x4x128xbf16>
    %22 = vector.shape_cast %21 : vector<1x4x128xbf16> to vector<4x128xbf16>
    %cst_22 = arith.constant dense<0.000000e+00> : vector<288x128xf32>
    %23 = tpu.matmul %20, %22, %cst_22 {dimension_numbers = #tpu.dot_dimension_numbers<[1], [0], [0], [1], [0, 0, 1, 1], [], []>} : vector<288x4xbf16>, vector<4x128xbf16>, vector<288x128xf32> -> vector<288x128xf32>
    %24 = arith.addf %18, %23 : vector<288x128xf32>
    %c0_23 = arith.constant 0 : index
    %c19 = arith.constant 19 : index
    %c0_24 = arith.constant 0 : index
    %25 = vector.load %arg1[%c0_23, %c19, %c0_24] : memref<1x328x4xbf16, #tpu.memory_space<vmem>>, vector<1x288x4xbf16>
    %26 = vector.shape_cast %25 : vector<1x288x4xbf16> to vector<288x4xbf16>
    %c4 = arith.constant 4 : index
    %c0_25 = arith.constant 0 : index
    %c0_26 = arith.constant 0 : index
    %27 = vector.load %arg2[%c4, %c0_25, %c0_26] : memref<9x4x128xbf16, #tpu.memory_space<vmem>>, vector<1x4x128xbf16>
    %28 = vector.shape_cast %27 : vector<1x4x128xbf16> to vector<4x128xbf16>
    %cst_27 = arith.constant dense<0.000000e+00> : vector<288x128xf32>
    %29 = tpu.matmul %26, %28, %cst_27 {dimension_numbers = #tpu.dot_dimension_numbers<[1], [0], [0], [1], [0, 0, 1, 1], [], []>} : vector<288x4xbf16>, vector<4x128xbf16>, vector<288x128xf32> -> vector<288x128xf32>
    %30 = arith.addf %24, %29 : vector<288x128xf32>
    %c0_28 = arith.constant 0 : index
    %c20 = arith.constant 20 : index
    %c0_29 = arith.constant 0 : index
    %31 = vector.load %arg1[%c0_28, %c20, %c0_29] : memref<1x328x4xbf16, #tpu.memory_space<vmem>>, vector<1x288x4xbf16>
    %32 = vector.shape_cast %31 : vector<1x288x4xbf16> to vector<288x4xbf16>
    %c5 = arith.constant 5 : index
    %c0_30 = arith.constant 0 : index
    %c0_31 = arith.constant 0 : index
    %33 = vector.load %arg2[%c5, %c0_30, %c0_31] : memref<9x4x128xbf16, #tpu.memory_space<vmem>>, vector<1x4x128xbf16>
    %34 = vector.shape_cast %33 : vector<1x4x128xbf16> to vector<4x128xbf16>
    %cst_32 = arith.constant dense<0.000000e+00> : vector<288x128xf32>
    %35 = tpu.matmul %32, %34, %cst_32 {dimension_numbers = #tpu.dot_dimension_numbers<[1], [0], [0], [1], [0, 0, 1, 1], [], []>} : vector<288x4xbf16>, vector<4x128xbf16>, vector<288x128xf32> -> vector<288x128xf32>
    %36 = arith.addf %30, %35 : vector<288x128xf32>
    %c0_33 = arith.constant 0 : index
    %c36 = arith.constant 36 : index
    %c0_34 = arith.constant 0 : index
    %37 = vector.load %arg1[%c0_33, %c36, %c0_34] : memref<1x328x4xbf16, #tpu.memory_space<vmem>>, vector<1x288x4xbf16>
    %38 = vector.shape_cast %37 : vector<1x288x4xbf16> to vector<288x4xbf16>
    %c6 = arith.constant 6 : index
    %c0_35 = arith.constant 0 : index
    %c0_36 = arith.constant 0 : index
    %39 = vector.load %arg2[%c6, %c0_35, %c0_36] : memref<9x4x128xbf16, #tpu.memory_space<vmem>>, vector<1x4x128xbf16>
    %40 = vector.shape_cast %39 : vector<1x4x128xbf16> to vector<4x128xbf16>
    %cst_37 = arith.constant dense<0.000000e+00> : vector<288x128xf32>
    %41 = tpu.matmul %38, %40, %cst_37 {dimension_numbers = #tpu.dot_dimension_numbers<[1], [0], [0], [1], [0, 0, 1, 1], [], []>} : vector<288x4xbf16>, vector<4x128xbf16>, vector<288x128xf32> -> vector<288x128xf32>
    %42 = arith.addf %36, %41 : vector<288x128xf32>
    %c0_38 = arith.constant 0 : index
    %c37 = arith.constant 37 : index
    %c0_39 = arith.constant 0 : index
    %43 = vector.load %arg1[%c0_38, %c37, %c0_39] : memref<1x328x4xbf16, #tpu.memory_space<vmem>>, vector<1x288x4xbf16>
    %44 = vector.shape_cast %43 : vector<1x288x4xbf16> to vector<288x4xbf16>
    %c7 = arith.constant 7 : index
    %c0_40 = arith.constant 0 : index
    %c0_41 = arith.constant 0 : index
    %45 = vector.load %arg2[%c7, %c0_40, %c0_41] : memref<9x4x128xbf16, #tpu.memory_space<vmem>>, vector<1x4x128xbf16>
    %46 = vector.shape_cast %45 : vector<1x4x128xbf16> to vector<4x128xbf16>
    %cst_42 = arith.constant dense<0.000000e+00> : vector<288x128xf32>
    %47 = tpu.matmul %44, %46, %cst_42 {dimension_numbers = #tpu.dot_dimension_numbers<[1], [0], [0], [1], [0, 0, 1, 1], [], []>} : vector<288x4xbf16>, vector<4x128xbf16>, vector<288x128xf32> -> vector<288x128xf32>
    %48 = arith.addf %42, %47 : vector<288x128xf32>
    %c0_43 = arith.constant 0 : index
    %c38 = arith.constant 38 : index
    %c0_44 = arith.constant 0 : index
    %49 = vector.load %arg1[%c0_43, %c38, %c0_44] : memref<1x328x4xbf16, #tpu.memory_space<vmem>>, vector<1x288x4xbf16>
    %50 = vector.shape_cast %49 : vector<1x288x4xbf16> to vector<288x4xbf16>
    %c8 = arith.constant 8 : index
    %c0_45 = arith.constant 0 : index
    %c0_46 = arith.constant 0 : index
    %51 = vector.load %arg2[%c8, %c0_45, %c0_46] : memref<9x4x128xbf16, #tpu.memory_space<vmem>>, vector<1x4x128xbf16>
    %52 = vector.shape_cast %51 : vector<1x4x128xbf16> to vector<4x128xbf16>
    %cst_47 = arith.constant dense<0.000000e+00> : vector<288x128xf32>
    %53 = tpu.matmul %50, %52, %cst_47 {dimension_numbers = #tpu.dot_dimension_numbers<[1], [0], [0], [1], [0, 0, 1, 1], [], []>} : vector<288x4xbf16>, vector<4x128xbf16>, vector<288x128xf32> -> vector<288x128xf32>
    %54 = arith.addf %48, %53 : vector<288x128xf32>
    %cst_48 = arith.constant 0.000000e+00 : f32
    %55 = vector.broadcast %cst_48 : f32 to vector<288x128xf32>
    %56 = arith.maximumf %54, %55 : vector<288x128xf32>
    %c0_49 = arith.constant 0 : index
    %c0_50 = arith.constant 0 : index
    %c0_51 = arith.constant 0 : index
    %57 = vector.load %arg3[%c0_49, %c0_50, %c0_51] : memref<1x288x128xf32, #tpu.memory_space<vmem>>, vector<1x288x128xf32>
    %58 = vector.shape_cast %57 : vector<1x288x128xf32> to vector<288x128xf32>
    %59 = vector.shape_cast %56 : vector<288x128xf32> to vector<1x288x128xf32>
    tpu.vector_store %arg3[%c0_49, %c0_50, %c0_51], %59 {strides = array<i32>} : memref<1x288x128xf32, #tpu.memory_space<vmem>>, vector<1x288x128xf32>,
    return
  }
  func.func @transform_0(%arg0: i32) -> (i32, i32, i32) {
    %c0_i32 = arith.constant 0 : i32
    %c0_i32_0 = arith.constant 0 : i32
    %c0_i32_1 = arith.constant 0 : i32
    return %arg0, %c0_i32, %c0_i32_0 : i32, i32, i32
  }
  func.func @transform_1(%arg0: i32) -> (i32, i32, i32) {
    %c0_i32 = arith.constant 0 : i32
    %c0_i32_0 = arith.constant 0 : i32
    %c0_i32_1 = arith.constant 0 : i32
    %c0_i32_2 = arith.constant 0 : i32
    return %c0_i32, %c0_i32_0, %c0_i32_1 : i32, i32, i32
  }
  func.func @transform_2(%arg0: i32) -> (i32, i32, i32) {
    %c0_i32 = arith.constant 0 : i32
    %c0_i32_0 = arith.constant 0 : i32
    %c0_i32_1 = arith.constant 0 : i32
    return %arg0, %c0_i32, %c0_i32_0 : i32, i32, i32
  }
}

</mosaic_0001>

<bundles_post_ra>
// kernel: conv_block_forward.1
= control target key start
LH: loop header
LB: loop body
LE: loop exit
PB: predicated region body
PF: predicated region fallthrough
CT: control target
= control target key end

     0   :  { %s4880_s9 = smov 0   ;;  %s5754_s0 = inlined_call_operand.vmem [shape: bf16[2,328,4], index: 0, kind: input, shape index: {}]   ;;  %s5755_s1 = inlined_call_operand.vmem [shape: bf16[9,4,128], index: 1, kind: input, shape index: {}]   ;;  %s5756_s2 = inlined_call_operand.vmem [shape: f32[2,288,128], index: 2, kind: output, shape index: {}]  }
   0x1 LB: > { %s3720_s10 = sadd.s32 4294967295, %s4863_s9   ;;  %p3724_p0 = scmp.ge.s32.totalorder %s4863_s9, 1  ;;  %s4863_s9 = sphi %s4880_s9, %s12_s9  }
   0x2   : > { %p112_p1 = scmp.lt.s32.totalorder %s4863_s9, 3 }
   0x4   : > { %p113_p2 = pnand %p3724_p0, %p112_p1 }
   0x5   : > { %vm482_vm0 = vcmask (!%p113_p2), 1041408   ;;  %v3841_v0 = vld [vmem:[%s5755_s1 + $0x8] sm:$0x3] (!%p113_p2)  ;;  %v3727_v1 = vld [vmem:[%s5755_s1 + $0x2] sm:$0x3] (!%p113_p2)  ;;  %p134_p3 = scmp.lt.s32.totalorder (!%p113_p2), %s3720_s10, 1 }
   0x6   : > { %116 = sbr.rel (%p113_p2) target bundleno = 571 (0x23b), region = 28  ;;  %4768 = vmatprep.subr.msk.bf16.mxu0 (!%p113_p2), %vm482_vm0, %v3841_v0  ;;  %4764 = vmatprep.subr.msk.bf16.mxu1 (!%p113_p2), %vm482_vm0, %v3727_v1  ;;  %v4897_v2 = vsel (!%p113_p2), %vm482_vm0, %v3841_v0, 0  ;;  %v484_v3 = vsel (!%p113_p2), %vm482_vm0, %v3727_v1, 0  ;;  %v3861_v4 = vld [vmem:[%s5755_s1 + $0xa] sm:$0x3] (!%p113_p2)  ;;  %vm427_vm2 = vcmask (!%p113_p2), 31744  }
   0x7   : > { %4285 = vmatpush3.bf16.msra.mxu0 (!%p113_p2), %v4897_v2  ;;  %4133 = vmatpush3.bf16.msra.mxu1 (!%p113_p2), %v484_v3  ;;  %v181_v5 = vld [vmem:[%s5755_s1] sm:$0x3] (!%p113_p2)  ;;  %vm278_vm1 = vsmask.f32 (!%p113_p2), 7424  ;;  %v4918_v6 = vsel (!%p113_p2), %vm482_vm0, %v3861_v4, 0  ;;  %vm2085_vm4 = vcmask (!%p113_p2), 1045504  }
   0x8   : > { %4770 = vmatprep.subr.msk.bf16.mxu0 (!%p113_p2), %vm482_vm0, %v3861_v4  ;;  %4765 = vmatprep.subr.msk.bf16.mxu1 (!%p113_p2), %vm482_vm0, %v181_v5  ;;  %vm1638_vm3 = vsmask.f32 (!%p113_p2), 6400  ;;  %v700_v12 = vsel (!%p113_p2), %vm482_vm0, %v181_v5, 0  ;;  %v4966_v39 = vld [vmem:[%s5755_s1 + $0x4] sm:$0x3] (!%p113_p2)  ;;  %vm885_vm5 = vcmask (!%p113_p2), 1046528  }
   0x9   : > { %v5000_v1 = vld [vmem:[%s5755_s1 + $0xc] sm:$0x3] (!%p113_p2)  ;;  %vm2838_vm6 = vsmask.f32 (!%p113_p2), 5376  ;;  %vm3285_vm7 = vcmask (!%p113_p2), 1044480  }
   0xd   : > { %s5758_s10 = smov (!%p134_p3, %s3720_s10), 1 }
   0xe   : > { %s4774_s19 = smul.u32 164, %s5758_s10 }
   0xf   : > { %s4775_s7 = smul.u32 288, %s5758_s10 }
  0x10   : > { %s4915_s22 = scalar_lea.vmem %s5754_s0, %s4774_s19 }
  0x11   : > { %v145_v7 = vld [vmem:[%s4915_s22] sm:$0xf]  ;;  %v4922_v8 = vld [vmem:[%s4915_s22 + $0x4] sm:$0xf]  ;;  %v4928_v10 = vld [vmem:[%s4915_s22 + $0x8] sm:$0xff]   ;;  %s5708_s12 = scalar_lea.vmem %s5756_s2, %s4775_s7 }
  0x12   : > { %v4925_v9 = vcombine.low %v145_v7, %v4922_v8  ;;  %v1193_v11 = vld [vmem:[%s4915_s22 + $0x8] sm:$0xe]  ;;  %v4933_v13 = vld [vmem:[%s4915_s22 + $0xc] sm:$0xf]  ;;  %v287_v16 = vshll.u32 %v4928_v10, 16  ;;  %v291_v17 = vshrl.u32 %v4928_v10, 16 }
  0x13   : > { %v4940_v18 = vld [vmem:[%s4915_s22 + $0x10] sm:$0xff]   ;;  %v4946_v20 = vcombine.low %v1193_v11, %v4933_v13  ;;  %v4954_v28 = vld [vmem:[%s4915_s22 + $0x18] sm:$0xff]   ;;  %v4960_v34 = vld [vmem:[%s4915_s22 + $0x20] sm:$0xff]  }
  0x14   : > { %v280_v14 = vshrl.u32 %v4925_v9, 16  ;;  %v282_v15 = vshll.u32 %v4925_v9, 16  ;;  %v4943_v19 = vld [vmem:[%s4915_s22 + $0x10] sm:$0xff]   ;;  %v289_v22 = vrot.slane %v287_v16, 1  ;;  %v1648_v23 = vshrl.u32 %v4940_v18, 16  ;;  %v4957_v33 = vld [vmem:[%s4915_s22 + $0x18] sm:$0xff]  }
  0x15   : > { %v1651_v24 = vshll.u32 %v4940_v18, 16  ;;  %v1640_v25 = vshrl.u32 %v4946_v20, 16  ;;  %v1643_v26 = vshll.u32 %v4946_v20, 16  ;;  %v295_v27 = vshll.u32 %v4943_v19, 16  ;;  %v4975_v48 = vld [vmem:[%s4915_s22 + $0x20] sm:$0xff]   ;;  %v4978_v49 = vld [vmem:[%s4915_s22 + $0x28] sm:$0xff]  }
  0x16   : > { %v284_v21 = vrot.slane %v282_v15, 1  ;;  %v293_v30 = vor.u32 %v291_v17, %v289_v22  ;;  %v1650_v31 = vrot.slane %v1648_v23, 1  ;;  %v1657_v38 = vshrl.u32 %v4954_v28, 16  ;;  %v4984_v54 = vld [vmem:[%s4915_s22 + $0x28] sm:$0xff]   ;;  %v4990_v59 = vld [vmem:[%s4915_s22 + $0x30] sm:$0xff]   ;;  %v5014_v23 = vld [vmem:[%s4915_s22 + $0x38] sm:$0xff]  }
  0x17   : > { %v1653_v32 = vrot.slane %v1651_v24, 2  ;;  %v1642_v35 = vrot.slane %v1640_v25, 1  ;;  %v1645_v36 = vrot.slane %v1643_v26, 2  ;;  %v297_v37 = vrot.slane %v295_v27, 1  ;;  %v4995_v0 = vld [vmem:[%s4915_s22 + $0x30] sm:$0xff]  }
  0x18   : > { %v285_v29 = vor.u32 %v284_v21, %v280_v14  ;;  %v1660_v42 = vshll.u32 %v4954_v28, 16  ;;  %v299_v43 = vshrl.u32 %v4943_v19, 16  ;;  %v1659_v46 = vrot.slane %v1657_v38, 1 }
  0x19   : > { %v1654_v41 = vor.u32 %v1653_v32, %v1650_v31  ;;  %v1646_v44 = vor.u32 %v1645_v36, %v1642_v35  ;;  %v298_v45 = vsel %vm278_vm1, %v293_v30, %v297_v37  ;;  %v303_v47 = vshll.u32 %v4957_v33, 16  ;;  %v5023_v35 = vld [vmem:[%s4915_s22 + $0x38] sm:$0xff]  }
  0x1a   : > { %v290_v40 = vsel %vm278_vm1, %v285_v29, %v289_v22  ;;  %v1662_v50 = vrot.slane %v1660_v42, 2  ;;  %v301_v51 = vor.u32 %v299_v43, %v297_v37  ;;  %v1666_v52 = vshrl.u32 %v4960_v34, 16 }
  0x1b   : > { %4134 = vmatprep.mubr.msk.bf16.mxu1 %vm427_vm2, %v290_v40  ;;  %v1669_v53 = vshll.u32 %v4960_v34, 16  ;;  %v1655_v55 = vsel %vm1638_vm3, %v1646_v44, %v1654_v41  ;;  %v305_v56 = vrot.slane %v303_v47, 1  ;;  %v307_v57 = vshrl.u32 %v4957_v33, 16  ;;  %v5034_v44 = vld [vmem:[%s4915_s22 + $0x40] sm:$0xff]  }
  0x1c   : > { %4135 = vmatmul.mubr.msk.bf16.vlgmr.msra.gmra.mrb[0].mxu1 %vm427_vm2, %v298_v45  ;;  %v311_v58 = vshll.u32 %v4975_v48, 16  ;;  %4286 = vmatprep.mubr.msk.bf16.mxu0 %vm427_vm2, %v1655_v55  ;;  %v1663_v60 = vor.u32 %v1662_v50, %v1659_v46  ;;  %v1668_v61 = vrot.slane %v1666_v52, 1  ;;  %v1675_v63 = vshrl.u32 %v4978_v49, 16 }
  0x1d   : > { %4171 = vmatpush3.bf16.msra.mxu1 %v700_v12  ;;  %v1671_v62 = vrot.slane %v1669_v53, 2  ;;  %v306_v3 = vsel %vm278_vm1, %v301_v51, %v305_v56  ;;  %v309_v4 = vor.u32 %v307_v57, %v305_v56  ;;  %v1678_v7 = vshll.u32 %v4978_v49, 16  ;;  %v5039_v51 = vld [vmem:[%s4915_s22 + $0x40] sm:$0xff]  }
  0x1e   : > { %4766 = vmatprep.subr.msk.bf16.mxu1 %vm482_vm0, %v4966_v39  ;;  %v313_v5 = vrot.slane %v311_v58, 1  ;;  %v1664_v11 = vsel %vm1638_vm3, %v1654_v41, %v1663_v60  ;;  %4138 = vmatprep.mubr.msk.bf16.mxu1 %vm427_vm2, %v306_v3  ;;  %v1677_v14 = vrot.slane %v1675_v63, 1  ;;  %v315_v15 = vshrl.u32 %v4975_v48, 16  ;;  %v5050_v63 = vld [vmem:[%s4915_s22 + $0x48] sm:$0xff]  }
  0x1f   : > { %v1672_v12 = vor.u32 %v1671_v62, %v1668_v61  ;;  %4287 = vmatmul.mubr.msk.bf16.vlgmr.msra.gmra.mrb[0].mxu0 %vm427_vm2, %v1664_v11  ;;  %v1680_v17 = vrot.slane %v1678_v7, 2  ;;  %v319_v21 = vshll.u32 %v4984_v54, 16  ;;  %v1684_v22 = vshrl.u32 %v4990_v59, 16  ;;  %v5047_v62 = vld [vmem:[%s4915_s22 + $0x48] sm:$0xff]  }
  0x20   : > { %v314_v16 = vsel %vm278_vm1, %v309_v4, %v313_v5  ;;  %4323 = vmatpush3.bf16.msra.mxu0 %v4918_v6  ;;  %v317_v25 = vor.u32 %v315_v15, %v313_v5  ;;  %v1687_v26 = vshll.u32 %v4990_v59, 16  ;;  %v323_v27 = vshrl.u32 %v4984_v54, 16 }
  0x21   : > { %v1673_v24 = vsel %vm1638_vm3, %v1663_v60, %v1672_v12  ;;  %v1681_v29 = vor.u32 %v1680_v17, %v1677_v14  ;;  %v321_v30 = vrot.slane %v319_v21, 1  ;;  %v1686_v31 = vrot.slane %v1684_v22, 1  ;;  %4771 = vmatprep.subr.msk.bf16.mxu0 %vm482_vm0, %v5000_v1  ;;  %v5059_v14 = vld [vmem:[%s4915_s22 + $0x50] sm:$0xff]  }
  0x22   : > { %4290 = vmatprep.mubr.msk.bf16.mxu0 %vm427_vm2, %v1673_v24  ;;  %v327_v32 = vshll.u32 %v4995_v0, 16  ;;  %v1689_v6 = vrot.slane %v1687_v26, 2  ;;  %v1693_v36 = vshrl.u32 %v5014_v23, 16  ;;  %v1696_v37 = vshll.u32 %v5014_v23, 16 }
  0x23   : > { %v331_v38 = vshrl.u32 %v4995_v0, 16  ;;  %v1682_v40 = vsel %vm1638_vm3, %v1672_v12, %v1681_v29  ;;  %v322_v41 = vsel %vm278_vm1, %v317_v25, %v321_v30  ;;  %v325_v42 = vor.u32 %v323_v27, %v321_v30  ;;  %v5067_v25 = vld [vmem:[%s4915_s22 + $0x50] sm:$0xff]  }
  0x24   : > { %4139 = vmatmul.mubr.msk.bf16.gmra.mrb[4].mxu1 %vm427_vm2, %v314_v16  ;;  %v329_v43 = vrot.slane %v327_v32, 1  ;;  %v1690_v45 = vor.u32 %v1689_v6, %v1686_v31  ;;  %v1695_v46 = vrot.slane %v1693_v36, 1  ;;  %v1698_v47 = vrot.slane %v1696_v37, 2 }
  0x25   : > { %4142 = vmatprep.mubr.msk.bf16.mxu1 %vm427_vm2, %v322_v41  ;;  %v335_v50 = vshll.u32 %v5023_v35, 16  ;;  %v1702_v55 = vshrl.u32 %v5034_v44, 16  ;;  %v1705_v56 = vshll.u32 %v5034_v44, 16  ;;  %v339_v61 = vshrl.u32 %v5023_v35, 16  ;;  %v5077_v41 = vld [vmem:[%s4915_s22 + $0x58] sm:$0xff]  }
  0x26   : > { %v330_v52 = vsel %vm278_vm1, %v325_v42, %v329_v43  ;;  %v333_v53 = vor.u32 %v331_v38, %v329_v43  ;;  %v1691_v57 = vsel %vm1638_vm3, %v1681_v29, %v1690_v45  ;;  %v1699_v58 = vor.u32 %v1698_v47, %v1695_v46  ;;  %v5072_v29 = vld [vmem:[%s4915_s22 + $0x58] sm:$0xff]  }
  0x27   : > { %v337_v60 = vrot.slane %v335_v50, 1  ;;  %4291 = vmatmul.mubr.msk.bf16.gmra.mrb[4].mxu0 %vm427_vm2, %v1682_v40  ;;  %v1704_v3 = vrot.slane %v1702_v55, 1  ;;  %v1707_v4 = vrot.slane %v1705_v56, 2  ;;  %v343_v5 = vshll.u32 %v5039_v51, 16 }
  0x28   : > { %v347_v7 = vshrl.u32 %v5039_v51, 16  ;;  %4294 = vmatprep.mubr.msk.bf16.mxu0 %vm427_vm2, %v1691_v57  ;;  %v1711_v12 = vshrl.u32 %v5047_v62, 16  ;;  %v1714_v16 = vshll.u32 %v5047_v62, 16  ;;  %v351_v17 = vshll.u32 %v5050_v63, 16  ;;  %v2079_v57 = vld [vmem:[%s4915_s22 + $0x8] sm:$0xc] }
  0x29   : > { %v338_v11 = vsel %vm278_vm1, %v333_v53, %v337_v60  ;;  %v1708_v15 = vor.u32 %v1707_v4, %v1704_v3  ;;  %v345_v21 = vrot.slane %v343_v5, 1  ;;  %v1720_v22 = vshrl.u32 %v5059_v14, 16 }
  0x2a   : > { %v1723_v24 = vshll.u32 %v5059_v14, 16  ;;  %v1700_v26 = vsel %vm1638_vm3, %v1690_v45, %v1699_v58  ;;  %v341_v27 = vor.u32 %v339_v61, %v337_v60  ;;  %v1713_v30 = vrot.slane %v1711_v12, 1 }
  0x2b   : > { %v1716_v31 = vrot.slane %v1714_v16, 2  ;;  %v349_v32 = vor.u32 %v347_v7, %v345_v21  ;;  %v353_v6 = vrot.slane %v351_v17, 1  ;;  %v1709_v36 = vsel %vm1638_vm3, %v1699_v58, %v1708_v15  ;;  %v5091_v58 = vld [vmem:[%s4915_s22 + $0x60] sm:$0xff]  }
  0x2c   : > { %4143 = vmatmul.mubr.msk.bf16.gmra.mrb[8].mxu1 %vm427_vm2, %v330_v52  ;;  %v1722_v37 = vrot.slane %v1720_v22, 1  ;;  %v1725_v38 = vrot.slane %v1723_v24, 2  ;;  %v359_v40 = vshll.u32 %v5067_v25, 16  ;;  %v346_v42 = vsel %vm278_vm1, %v341_v27, %v345_v21 }
  0x2d   : > { %4146 = vmatprep.mubr.msk.bf16.mxu1 %vm427_vm2, %v338_v11  ;;  %v355_v43 = vshrl.u32 %v5050_v63, 16  ;;  %v1729_v45 = vshrl.u32 %v5072_v29, 16  ;;  %v1732_v46 = vshll.u32 %v5072_v29, 16  ;;  %v1717_v47 = vor.u32 %v1716_v31, %v1713_v30  ;;  %v5096_v11 = vld [vmem:[%s4915_s22 + $0x68] sm:$0xff]  }
  0x2e   : > { %v354_v50 = vsel %vm278_vm1, %v349_v32, %v353_v6  ;;  %v363_v52 = vshrl.u32 %v5067_v25, 16  ;;  %v367_v53 = vshll.u32 %v5077_v41, 16  ;;  %v1726_v55 = vor.u32 %v1725_v38, %v1722_v37  ;;  %v5113_v32 = vld [vmem:[%s4915_s22 + $0x70] sm:$0xff]  }
  0x2f   : > { %4295 = vmatmul.mubr.msk.bf16.gmra.mrb[8].mxu0 %vm427_vm2, %v1700_v26  ;;  %v361_v56 = vrot.slane %v359_v40, 1  ;;  %v357_v60 = vor.u32 %v355_v43, %v353_v6  ;;  %v1731_v61 = vrot.slane %v1729_v45, 1  ;;  %v1734_v3 = vrot.slane %v1732_v46, 2  ;;  %v5119_v40 = vld [vmem:[%s4915_s22 + $0x78] sm:$0xff]  }
  0x30   : > { %4298 = vmatprep.mubr.msk.bf16.mxu0 %vm427_vm2, %v1709_v36  ;;  %v1718_v4 = vsel %vm1638_vm3, %v1708_v15, %v1717_v47  ;;  %v369_v7 = vrot.slane %v367_v53, 1  ;;  %v1727_v12 = vsel %vm1638_vm3, %v1717_v47, %v1726_v55  ;;  %v3862_v16 = vcombine.low %v2079_v57, %v4933_v13 }
  0x31   : > { %v365_v5 = vor.u32 %v363_v52, %v361_v56  ;;  %v375_v17 = vshll.u32 %v5091_v58, 16  ;;  %v362_v21 = vsel %vm278_vm1, %v357_v60, %v361_v56  ;;  %v371_v22 = vshrl.u32 %v5077_v41, 16  ;;  %v5134_v56 = vld [vmem:[%s4915_s22 + $0x80] sm:$0xff]  }
  0x32   : > { %v5105_v15 = vor.u32 %v1734_v3, %v1731_v61  ;;  %v379_v26 = vshrl.u32 %v5091_v58, 16  ;;  %v383_v27 = vshll.u32 %v5096_v11, 16  ;;  %v2086_v13 = vrot.slane %v3862_v16, 2 }
  0x33   : > { %v370_v24 = vsel %vm278_vm1, %v365_v5, %v369_v7  ;;  %v2087_v30 = vrot.slane %v4940_v18, 2  ;;  %v377_v31 = vrot.slane %v375_v17, 1  ;;  %v373_v6 = vor.u32 %v371_v22, %v369_v7 }
  0x34   : > { %4147 = vmatmul.mubr.msk.bf16.gmra.mrb[12].mxu1 %vm427_vm2, %v346_v42  ;;  %v1736_v36 = vsel %vm1638_vm3, %v1726_v55, %v5105_v15  ;;  %v385_v38 = vrot.slane %v383_v27, 1  ;;  %v391_v18 = vshll.u32 %v5113_v32, 16  ;;  %v2089_v45 = vrot.slane %v4954_v28, 2  ;;  %v5164_v27 = vld [vmem:[%s4915_s22 + $0x90] ss:$0 sps:$4 sm:$0x11]  }
  0x35   : > { %4150 = vmatprep.mubr.msk.bf16.mxu1 %vm427_vm2, %v354_v50  ;;  %v381_v37 = vor.u32 %v379_v26, %v377_v31  ;;  %v2088_v42 = vsel %vm2085_vm4, %v2086_v13, %v2087_v30  ;;  %v378_v43 = vsel %vm278_vm1, %v373_v6, %v377_v31  ;;  %v387_v46 = vshrl.u32 %v5096_v11, 16 }
  0x36   : > { %v395_v50 = vshrl.u32 %v5113_v32, 16  ;;  %v399_v52 = vshll.u32 %v5119_v40, 16  ;;  %v2091_v53 = vrot.slane %v4960_v34, 2  ;;  %v393_v55 = vrot.slane %v391_v18, 1  ;;  %v5147_v34 = vld [vmem:[%s5755_s1 + $0xe] sm:$0x3] }
  0x37   : > { %4299 = vmatmul.mubr.msk.bf16.gmra.mrb[12].mxu0 %vm427_vm2, %v1718_v4  ;;  %v386_v47 = vsel %vm278_vm1, %v381_v37, %v385_v38  ;;  %v2617_v28 = vsel %vm482_vm0, %v5000_v1, 0  ;;  %v389_v57 = vor.u32 %v387_v46, %v385_v38  ;;  %v2090_v60 = vsel %vm2085_vm4, %v2087_v30, %v2089_v45  ;;  %v5141_v4 = vld [vmem:[%s4915_s22 + $0x88] sm:$0xff]  }
  0x38   : > { %4302 = vmatprep.mubr.msk.bf16.mxu0 %vm427_vm2, %v1727_v12  ;;  %v397_v61 = vor.u32 %v395_v50, %v393_v55  ;;  %v401_v3 = vrot.slane %v399_v52, 1  ;;  %v2092_v5 = vsel %vm2085_vm4, %v2089_v45, %v2091_v53  ;;  %v407_v7 = vshll.u32 %v5134_v56, 16 }
  0x39   : > { %v394_v1 = vsel %vm278_vm1, %v389_v57, %v393_v55  ;;  %v2093_v12 = vrot.slane %v4978_v49, 2  ;;  %v403_v16 = vshrl.u32 %v5119_v40, 16  ;;  %v415_v22 = vshll.u32 %v5141_v4, 16  ;;  %v5191_v55 = vld [vmem:[%s4915_s22 + $0x60] sm:$0xff]   ;;  %v5210_v57 = vld [vmem:[%s4915_s22 + $0x68] sm:$0xff]  }
  0x3a   : > { %v402_v17 = vsel %vm278_vm1, %v397_v61, %v401_v3  ;;  %v409_v26 = vrot.slane %v407_v7, 1  ;;  %v423_v37 = vshll.u32 %v5164_v27, 16  ;;  %v2097_v38 = vrot.slane %v5014_v23, 2  ;;  %v5228_v7 = vld [vmem:[%s4915_s22 + $0x78] sm:$0xff]  }
  0x3b   : > { %v405_v49 = vor.u32 %v403_v16, %v401_v3  ;;  %v2094_v13 = vsel %vm2085_vm4, %v2091_v53, %v2093_v12  ;;  %v417_v31 = vrot.slane %v415_v22, 1  ;;  %v2099_v18 = vrot.slane %v5034_v44, 2  ;;  %v5244_v22 = vld [vmem:[%s4915_s22 + $0x88] sm:$0xff]  }
  0x3c   : > { %4151 = vmatmul.mubr.msk.bf16.gmra.mrb[16].mxu1 %vm427_vm2, %v362_v21  ;;  %v411_v21 = vshrl.u32 %v5134_v56, 16  ;;  %v425_v45 = vrot.slane %v423_v37, 1  ;;  %v2101_v23 = vrot.slane %v5047_v62, 2  ;;  %v2103_v44 = vrot.slane %v5059_v14, 2 }
  0x3d   : > { %4154 = vmatprep.mubr.msk.bf16.mxu1 %vm427_vm2, %v370_v24  ;;  %v2095_v24 = vrot.slane %v4990_v59, 2  ;;  %v410_v59 = vsel %vm278_vm1, %v405_v49, %v409_v26  ;;  %v2105_v62 = vrot.slane %v5072_v29, 2  ;;  %v978_v14 = vsel %vm482_vm0, %v4966_v39, 0 }
  0x3e   : > { %v413_v30 = vor.u32 %v411_v21, %v409_v26  ;;  %v2102_v52 = vsel %vm2085_vm4, %v2099_v18, %v2101_v23  ;;  %v2104_v53 = vsel %vm2085_vm4, %v2101_v23, %v2103_v44  ;;  %v2109_v61 = vrot.slane %v5210_v57, 2  ;;  %v5248_v26 = vld [vmem:[%s4915_s22 + $0x90] sm:$0xff]  }
  0x3f   : > { %4303 = vmatmul.mubr.msk.bf16.gmra.mrb[16].mxu0 %vm427_vm2, %v1736_v36  ;;  %v2096_v6 = vsel %vm2085_vm4, %v2093_v12, %v2095_v24  ;;  %v419_v36 = vshrl.u32 %v5141_v4, 16  ;;  %v2098_v46 = vsel %vm2085_vm4, %v2095_v24, %v2097_v38  ;;  %v2106_v29 = vsel %vm2085_vm4, %v2103_v44, %v2105_v62  ;;  %v5232_v12 = vld [vmem:[%s4915_s22 + $0x80] sm:$0xff]  }
  0x40   : > { %4324 = vmatprep.mubr.msk.bf16.mxu0 %vm427_vm2, %v2088_v42  ;;  %v418_v42 = vsel %vm278_vm1, %v413_v30, %v417_v31  ;;  %v2113_v16 = vrot.slane %v5228_v7, 2  ;;  %v2117_v49 = vrot.slane %v5244_v22, 2  ;;  %v2393_v30 = vld [vmem:[%s4915_s22 + $0x10] sm:$0xc] }
  0x44   : > { %4155 = vmatmul.mubr.msk.bf16.gmra.mrb[20].mxu1 %vm427_vm2, %v378_v43  ;;  %v421_v43 = vor.u32 %v419_v36, %v417_v31  ;;  %v5258_v31 = vld [vmem:[%s4915_s22 + $0x14] sm:$0xf] }
  0x45   : > { %4158 = vmatprep.mubr.msk.bf16.mxu1 %vm427_vm2, %v386_v47  ;;  %v2100_v47 = vsel %vm2085_vm4, %v2097_v38, %v2099_v18  ;;  %v5268_v37 = vcombine.low %v2393_v30, %v5258_v31  ;;  %v5271_v38 = vld [vmem:[%s4915_s22 + $0x18] sm:$0xff]  }
  0x46   : > { %v426_v50 = vsel %vm278_vm1, %v421_v43, %v425_v45  ;;  %v2526_v43 = vrot.slane %v5271_v38, 2 }
  0x47   : > { %4325 = vmatmul.mubr.msk.bf16.vlgmr.msra.gmra.mrb[0].mxu0 %vm427_vm2, %v2090_v60  ;;  %v5216_v60 = vld [vmem:[%s4915_s22 + $0x70] sm:$0xff]   ;;  %v2525_v18 = vrot.slane %v5268_v37, 2 }
  0x48   : > { %4361 = vmatpush3.bf16.msra.mxu0 %v2617_v28  ;;  %4328 = vmatprep.mubr.msk.bf16.mxu0 %vm427_vm2, %v2092_v5  ;;  %v2107_v28 = vrot.slane %v5191_v55, 2  ;;  %v2111_v3 = vrot.slane %v5216_v60, 2 }
  0x49   : > { %4772 = vmatprep.subr.msk.bf16.mxu0 %vm482_vm0, %v5147_v34 }
  0x4a   : > { %v2108_v39 = vsel %vm2085_vm4, %v2105_v62, %v2107_v28  ;;  %v2110_v5 = vsel %vm2085_vm4, %v2107_v28, %v2109_v61  ;;  %v2114_v21 = vsel %vm2085_vm4, %v2111_v3, %v2113_v16  ;;  %v3064_v62 = vsel %vm482_vm0, %v5147_v34, 0  ;;  %v5306_v28 = vld [vmem:[%s4915_s22 + $0x38] sm:$0xff]  }
  0x4c   : > { %4159 = vmatmul.mubr.msk.bf16.gmra.mrb[24].mxu1 %vm427_vm2, %v394_v1  ;;  %v2112_v1 = vsel %vm2085_vm4, %v2109_v61, %v2111_v3  ;;  %v2534_v61 = vrot.slane %v5306_v28, 2  ;;  %v5325_v3 = vld [vmem:[%s4915_s22 + $0x40] sm:$0xff]  }
  0x4d   : > { %4162 = vmatprep.mubr.msk.bf16.mxu1 %vm427_vm2, %v402_v17  ;;  %v2115_v17 = vrot.slane %v5232_v12, 2 }
  0x4f   : > { %4329 = vmatmul.mubr.msk.bf16.gmra.mrb[4].mxu0 %vm427_vm2, %v2094_v13  ;;  %v2116_v24 = vsel %vm2085_vm4, %v2113_v16, %v2115_v17  ;;  %v2119_v13 = vrot.slane %v5248_v26, 2  ;;  %v879_v16 = vld [vmem:[%s4915_s22] sm:$0xe] }
  0x50   : > { %4332 = vmatprep.mubr.msk.bf16.mxu0 %vm427_vm2, %v2096_v6  ;;  %v2118_v6 = vsel %vm2085_vm4, %v2115_v17, %v2117_v49  ;;  %v2536_v17 = vrot.slane %v5325_v3, 2 }
  0x51   : > { %v2120_v36 = vsel %vm2085_vm4, %v2117_v49, %v2119_v13 }
  0x52   : > { %v2537_v49 = vsel %vm2085_vm4, %v2534_v61, %v2536_v17 }
  0x54   : > { %4163 = vmatmul.mubr.msk.bf16.gmra.mrb[28].mxu1 %vm427_vm2, %v410_v59  ;;  %v5264_v59 = vld [vmem:[%s4915_s22 + $0x98] ss:$0 sps:$4 sm:$0x33]  }
  0x55   : > { %4166 = vmatprep.mubr.msk.bf16.mxu1 %vm427_vm2, %v418_v42  ;;  %v2121_v42 = vrot.slane %v5264_v59, 2 }
  0x57   : > { %4333 = vmatmul.mubr.msk.bf16.gmra.mrb[8].mxu0 %vm427_vm2, %v2098_v46  ;;  %v2122_v45 = vsel %vm2085_vm4, %v2119_v13, %v2121_v42  ;;  %v5284_v46 = vld [vmem:[%s4915_s22 + $0x20] sm:$0xff]   ;;  %v5343_v13 = vld [vmem:[%s4915_s22 + $0x50] sm:$0xff]  }
  0x58   : > { %4336 = vmatprep.mubr.msk.bf16.mxu0 %vm427_vm2, %v2100_v47  ;;  %v2527_v47 = vsel %vm2085_vm4, %v2525_v18, %v2526_v43  ;;  %v2528_v23 = vrot.slane %v5284_v46, 2  ;;  %v2540_v42 = vrot.slane %v5343_v13, 2 }
  0x5c   : > { %4167 = vmatmul.mubr.msk.bf16.gmra.mrb[32].mxu1 %vm427_vm2, %v426_v50  ;;  %v5288_v50 = vld [vmem:[%s4915_s22 + $0x28] sm:$0xff]  }
  0x5d   : > { %4172 = vmatprep.mubr.msk.bf16.mxu1 %vm427_vm2, %v4925_v9  ;;  %v5202_v9 = vld [vmem:[%s5755_s1 + $0x6] sm:$0x3]  ;;  %v2530_v44 = vrot.slane %v5288_v50, 2 }
  0x5f   : > { %4337 = vmatmul.mubr.msk.bf16.gmra.mrb[12].mxu0 %vm427_vm2, %v2102_v52  ;;  %v2529_v52 = vsel %vm2085_vm4, %v2526_v43, %v2528_v23 }
  0x60   : > { %4340 = vmatprep.mubr.msk.bf16.mxu0 %vm427_vm2, %v2104_v53  ;;  %v5300_v53 = vld [vmem:[%s4915_s22 + $0x30] sm:$0xff]  }
  0x64   : > { %4173 = vmatmul.mubr.msk.bf16.vlgmr.msra.gmra.mrb[0].mxu1 %vm427_vm2, %v4928_v10 }
  0x65   : > { %4176 = vmatprep.mubr.msk.bf16.mxu1 %vm427_vm2, %v4943_v19  ;;  %4209 = vmatpush3.bf16.msra.mxu1 %v978_v14  ;;  %v2531_v14 = vsel %vm2085_vm4, %v2528_v23, %v2530_v44  ;;  %v891_v23 = vrot.slane %v4957_v33, 1 }
  0x66   : > { %4767 = vmatprep.subr.msk.bf16.mxu1 %vm482_vm0, %v5202_v9 }
  0x67   : > { %4341 = vmatmul.mubr.msk.bf16.gmra.mrb[16].mxu0 %vm427_vm2, %v2106_v29  ;;  %v5311_v29 = vld [vmem:[%s5755_s1 + $0x10] sm:$0x3] }
  0x68   : > { %4344 = vmatprep.mubr.msk.bf16.mxu0 %vm427_vm2, %v2108_v39  ;;  %v2532_v39 = vrot.slane %v5300_v53, 2 }
  0x6a   : > { %v2533_v34 = vsel %vm2085_vm4, %v2530_v44, %v2532_v39 }
  0x6c   : > { %4177 = vmatmul.mubr.msk.bf16.gmra.mrb[4].mxu1 %vm427_vm2, %v4957_v33 }
  0x6d   : > { %4180 = vmatprep.mubr.msk.bf16.mxu1 %vm427_vm2, %v4975_v48 }
  0x6f   : > { %4345 = vmatmul.mubr.msk.bf16.gmra.mrb[20].mxu0 %vm427_vm2, %v2110_v5  ;;  %v2535_v5 = vsel %vm2085_vm4, %v2532_v39, %v2534_v61  ;;  %v1417_v39 = vsel %vm482_vm0, %v5202_v9, 0  ;;  %v893_v61 = vrot.slane %v4975_v48, 1  ;;  %v4846_v9 = vld [vmem:[%s5755_s1 + $0x8] sm:$0x3] }
  0x70   : > { %4348 = vmatprep.mubr.msk.bf16.mxu0 %vm427_vm2, %v2112_v1  ;;  %v5329_v1 = vld [vmem:[%s4915_s22 + $0x48] sm:$0xff]  }
  0x71   : > { %v894_v48 = vsel %vm885_vm5, %v891_v23, %v893_v61 }
  0x74   : > { %4181 = vmatmul.mubr.msk.bf16.gmra.mrb[8].mxu1 %vm427_vm2, %v4984_v54 }
  0x75   : > { %4184 = vmatprep.mubr.msk.bf16.mxu1 %vm427_vm2, %v4995_v0 }
  0x77   : > { %4349 = vmatmul.mubr.msk.bf16.gmra.mrb[24].mxu0 %vm427_vm2, %v2114_v21  ;;  %v3784_v21 = vcombine.low %v879_v16, %v4922_v8  ;;  %v5348_v8 = vld [vmem:[%s4915_s22 + $0x58] sm:$0xff]   ;;  %v895_v16 = vrot.slane %v4984_v54, 1 }
  0x78   : > { %4352 = vmatprep.mubr.msk.bf16.mxu0 %vm427_vm2, %v2116_v24  ;;  %v2538_v24 = vrot.slane %v5329_v1, 2  ;;  %v2542_v43 = vrot.slane %v5348_v8, 2 }
  0x79   : > { %v886_v30 = vrot.slane %v3784_v21, 1  ;;  %v5390_v21 = vld [vmem:[%s4915_s22 + $0x78] sm:$0xff]   ;;  %v896_v54 = vsel %vm885_vm5, %v893_v61, %v895_v16 }
  0x7a   : > { %v2543_v44 = vsel %vm2085_vm4, %v2540_v42, %v2542_v43 }
  0x7c   : > { %4185 = vmatmul.mubr.msk.bf16.gmra.mrb[12].mxu1 %vm427_vm2, %v5023_v35 }
  0x7d   : > { %4188 = vmatprep.mubr.msk.bf16.mxu1 %vm427_vm2, %v5039_v51 }
  0x7f   : > { %4353 = vmatmul.mubr.msk.bf16.gmra.mrb[28].mxu0 %vm427_vm2, %v2118_v6  ;;  %v887_v6 = vrot.slane %v4928_v10, 1  ;;  %v889_v10 = vrot.slane %v4943_v19, 1 }
  0x80   : > { %4356 = vmatprep.mubr.msk.bf16.mxu0 %vm427_vm2, %v2120_v36  ;;  %v2539_v36 = vsel %vm2085_vm4, %v2536_v17, %v2538_v24 }
  0x81   : > { %v888_v18 = vsel %vm885_vm5, %v886_v30, %v887_v6  ;;  %v897_v30 = vrot.slane %v4995_v0, 1 }
  0x84   : > { %4189 = vmatmul.mubr.msk.bf16.gmra.mrb[16].mxu1 %vm427_vm2, %v5050_v63 }
  0x85   : > { %4192 = vmatprep.mubr.msk.bf16.mxu1 %vm427_vm2, %v5067_v25 }
  0x87   : > { %4357 = vmatmul.mubr.msk.bf16.gmra.mrb[32].mxu0 %vm427_vm2, %v2122_v45  ;;  %v2541_v45 = vsel %vm2085_vm4, %v2538_v24, %v2540_v42  ;;  %v899_v42 = vrot.slane %v5023_v35, 1  ;;  %v901_v35 = vrot.slane %v5039_v51, 1 }
  0x88   : > { %4362 = vmatprep.mubr.msk.bf16.mxu0 %vm427_vm2, %v2527_v47  ;;  %v5361_v47 = vld [vmem:[%s4915_s22 + $0x60] sm:$0xff]  }
  0x89   : > { %v2544_v19 = vrot.slane %v5361_v47, 2 }
  0x8c   : > { %4193 = vmatmul.mubr.msk.bf16.gmra.mrb[20].mxu1 %vm427_vm2, %v5077_v41 }
  0x8d   : > { %4196 = vmatprep.mubr.msk.bf16.mxu1 %vm427_vm2, %v5091_v58 }
  0x8f   : > { %4363 = vmatmul.mubr.msk.bf16.vlgmr.msra.gmra.mrb[0].mxu0 %vm427_vm2, %v2529_v52  ;;  %v5366_v52 = vld [vmem:[%s4915_s22 + $0x68] sm:$0xff]  }
  0x90   : > { %4399 = vmatpush3.bf16.msra.mxu0 %v3064_v62  ;;  %4366 = vmatprep.mubr.msk.bf16.mxu0 %vm427_vm2, %v2531_v14  ;;  %v890_v62 = vsel %vm885_vm5, %v887_v6, %v889_v10  ;;  %v892_v14 = vsel %vm885_vm5, %v889_v10, %v891_v23  ;;  %v2546_v33 = vrot.slane %v5366_v52, 2  ;;  %v898_v10 = vsel %vm885_vm5, %v895_v16, %v897_v30 }
  0x91   : > { %4773 = vmatprep.subr.msk.bf16.mxu0 %vm482_vm0, %v5311_v29  ;;  %v2840_v16 = vshrl.u32 %v5268_v37, 16 }
  0x92   : > { %v2547_v17 = vsel %vm2085_vm4, %v2544_v19, %v2546_v33 }
  0x94   : > { %4197 = vmatmul.mubr.msk.bf16.gmra.mrb[24].mxu1 %vm427_vm2, %v5096_v11 }
  0x95   : > { %4200 = vmatprep.mubr.msk.bf16.mxu1 %vm427_vm2, %v5113_v32 }
  0x97   : > { %4367 = vmatmul.mubr.msk.bf16.gmra.mrb[4].mxu0 %vm427_vm2, %v2533_v34  ;;  %v2545_v34 = vsel %vm2085_vm4, %v2542_v43, %v2544_v19  ;;  %v5408_v43 = vld [vmem:[%s4915_s22 + $0x88] sm:$0xff]   ;;  %v903_v19 = vrot.slane %v5050_v63, 1  ;;  %v2843_v63 = vshll.u32 %v5268_v37, 16 }
  0x98   : > { %4370 = vmatprep.mubr.msk.bf16.mxu0 %vm427_vm2, %v2535_v5  ;;  %v5381_v5 = vld [vmem:[%s4915_s22 + $0x70] sm:$0xff]   ;;  %v2554_v23 = vrot.slane %v5408_v43, 2 }
  0x99   : > { %v2548_v24 = vrot.slane %v5381_v5, 2  ;;  %v904_v51 = vsel %vm885_vm5, %v901_v35, %v903_v19 }
  0x9b   : > { %v2549_v6 = vsel %vm2085_vm4, %v2546_v33, %v2548_v24  ;;  %v902_v33 = vsel %vm885_vm5, %v899_v42, %v901_v35 }
  0x9c   : > { %4201 = vmatmul.mubr.msk.bf16.gmra.mrb[28].mxu1 %vm427_vm2, %v5119_v40 }
  0x9d   : > { %4204 = vmatprep.mubr.msk.bf16.mxu1 %vm427_vm2, %v5134_v56 }
  0x9f   : > { %4371 = vmatmul.mubr.msk.bf16.gmra.mrb[8].mxu0 %vm427_vm2, %v2537_v49  ;;  %v2550_v49 = vrot.slane %v5390_v21, 2 }
  0xa0   : > { %4374 = vmatprep.mubr.msk.bf16.mxu0 %vm427_vm2, %v2539_v36  ;;  %v5403_v36 = vld [vmem:[%s4915_s22 + $0x80] sm:$0xff]  }
  0xa1   : > { %v2552_v0 = vrot.slane %v5403_v36, 2 }
  0xa4   : > { %4205 = vmatmul.mubr.msk.bf16.gmra.mrb[32].mxu1 %vm427_vm2, %v5141_v4 }
  0xa5   : > { %4210 = vmatprep.mubr.msk.bf16.mxu1 %vm427_vm2, %v888_v18  ;;  %v2551_v18 = vsel %vm2085_vm4, %v2548_v24, %v2550_v49 }
  0xa7   : > { %4375 = vmatmul.mubr.msk.bf16.gmra.mrb[12].mxu0 %vm427_vm2, %v2541_v45  ;;  %v900_v45 = vsel %vm885_vm5, %v897_v30, %v899_v42  ;;  %v907_v30 = vrot.slane %v5077_v41, 1  ;;  %v2845_v42 = vrot.slane %v2843_v63, 3  ;;  %v2866_v41 = vshrl.u32 %v5288_v50, 16 }
  0xa8   : > { %4378 = vmatprep.mubr.msk.bf16.mxu0 %vm427_vm2, %v2543_v44  ;;  %v2553_v44 = vsel %vm2085_vm4, %v2550_v49, %v2552_v0  ;;  %v4842_v49 = vld [vmem:[%s4915_s22 + $0xa0] ss:$0 sps:$4 sm:$0x33]  }
  0xac   : > { %4211 = vmatmul.mubr.msk.bf16.vlgmr.msra.gmra.mrb[0].mxu1 %vm427_vm2, %v890_v62  ;;  %v5421_v62 = vld [vmem:[%s4915_s22 + $0x90] sm:$0xff]  }
  0xad   : > { %4214 = vmatprep.mubr.msk.bf16.mxu1 %vm427_vm2, %v892_v14  ;;  %4247 = vmatpush3.bf16.msra.mxu1 %v1417_v39  ;;  %v5425_v14 = vld [vmem:[%s4915_s22 + $0x98] sm:$0xff]   ;;  %v2555_v39 = vsel %vm2085_vm4, %v2552_v0, %v2554_v23  ;;  %v2556_v61 = vrot.slane %v5421_v62, 2  ;;  %v2560_v0 = vrot.slane %v4842_v49, 2 }
  0xae   : > { %4769 = vmatprep.subr.msk.bf16.mxu1 %vm482_vm0, %v4846_v9  ;;  %v2848_v9 = vshrl.u32 %v5271_v38, 16 }
  0xaf   : > { %4379 = vmatmul.mubr.msk.bf16.gmra.mrb[16].mxu0 %vm427_vm2, %v2545_v34  ;;  %v2558_v34 = vrot.slane %v5425_v14, 2  ;;  %v2557_v24 = vsel %vm2085_vm4, %v2554_v23, %v2556_v61  ;;  %v2860_v23 = vshll.u32 %v5284_v46, 16 }
  0xb0   : > { %4382 = vmatprep.mubr.msk.bf16.mxu0 %vm427_vm2, %v2547_v17  ;;  %v2851_v17 = vshll.u32 %v5271_v38, 16  ;;  %v2850_v37 = vrot.slane %v2848_v9, 2  ;;  %v2868_v9 = vrot.slane %v2866_v41, 2  ;;  %v2893_v41 = vshrl.u32 %v5325_v3, 16 }
  0xb4   : > { %4215 = vmatmul.mubr.msk.bf16.gmra.mrb[4].mxu1 %vm427_vm2, %v894_v48  ;;  %v905_v48 = vrot.slane %v5067_v25, 1 }
  0xb5   : > { %4218 = vmatprep.mubr.msk.bf16.mxu1 %vm427_vm2, %v896_v54  ;;  %v2559_v54 = vsel %vm2085_vm4, %v2556_v61, %v2558_v34 }
  0xb6   : > { %v908_v25 = vsel %vm885_vm5, %v905_v48, %v907_v30 }
  0xb7   : > { %4383 = vmatmul.mubr.msk.bf16.gmra.mrb[20].mxu0 %vm427_vm2, %v2549_v6  ;;  %v2842_v6 = vrot.slane %v2840_v16, 2  ;;  %v911_v16 = vrot.slane %v5096_v11, 1  ;;  %v2884_v11 = vshrl.u32 %v5306_v28, 16 }
  0xb8   : > { %4386 = vmatprep.mubr.msk.bf16.mxu0 %vm427_vm2, %v2551_v18  ;;  %v2853_v18 = vrot.slane %v2851_v17, 3 }
  0xb9   : > { %v2846_v35 = vor.u32 %v2845_v42, %v2842_v6  ;;  %v2887_v6 = vshll.u32 %v5306_v28, 16 }
  0xbc   : > { %4219 = vmatmul.mubr.msk.bf16.gmra.mrb[8].mxu1 %vm427_vm2, %v898_v10  ;;  %v906_v10 = vsel %vm885_vm5, %v903_v19, %v905_v48  ;;  %v909_v19 = vrot.slane %v5091_v58, 1  ;;  %v2875_v58 = vshrl.u32 %v5300_v53, 16 }
  0xbd   : > { %4222 = vmatprep.mubr.msk.bf16.mxu1 %vm427_vm2, %v900_v45  ;;  %v2857_v45 = vshrl.u32 %v5284_v46, 16 }
  0xbe   : > { %v910_v48 = vsel %vm885_vm5, %v907_v30, %v909_v19  ;;  %v913_v30 = vrot.slane %v5113_v32, 1  ;;  %v2896_v32 = vshll.u32 %v5325_v3, 16 }
  0xbf   : > { %4387 = vmatmul.mubr.msk.bf16.gmra.mrb[24].mxu0 %vm427_vm2, %v2553_v44  ;;  %v2854_v44 = vor.u32 %v2853_v18, %v2850_v37  ;;  %v2859_v61 = vrot.slane %v2857_v45, 2  ;;  %v2877_v37 = vrot.slane %v2875_v58, 2  ;;  %v2886_v45 = vrot.slane %v2884_v11, 2 }
  0xc0   : > { %4390 = vmatprep.mubr.msk.bf16.mxu0 %vm427_vm2, %v2555_v39  ;;  %v2869_v39 = vshll.u32 %v5288_v50, 16  ;;  %v2911_v58 = vshrl.u32 %v5343_v13, 16  ;;  %v2923_v11 = vshll.u32 %v5348_v8, 16 }
  0xc1   : > { %v2855_v63 = vsel %vm2838_vm6, %v2846_v35, %v2854_v44  ;;  %v914_v35 = vsel %vm885_vm5, %v911_v16, %v913_v30 }
  0xc2   : > { %v2871_v17 = vrot.slane %v2869_v39, 3 }
  0xc4   : > { %4223 = vmatmul.mubr.msk.bf16.gmra.mrb[12].mxu1 %vm427_vm2, %v902_v33  ;;  %v2561_v33 = vsel %vm2085_vm4, %v2558_v34, %v2560_v0  ;;  %v2878_v34 = vshll.u32 %v5300_v53, 16  ;;  %v2872_v49 = vor.u32 %v2871_v17, %v2868_v9  ;;  %v3378_v0 = vsel %vm482_vm0, %v5311_v29, 0 }
  0xc5   : > { %4226 = vmatprep.mubr.msk.bf16.mxu1 %vm427_vm2, %v904_v51  ;;  %v2862_v51 = vrot.slane %v2860_v23, 3  ;;  %v2889_v23 = vrot.slane %v2887_v6, 3  ;;  %v2902_v29 = vshrl.u32 %v5329_v1, 16 }
  0xc6   : > { %v2880_v18 = vrot.slane %v2878_v34, 3  ;;  %v2914_v34 = vshll.u32 %v5343_v13, 16 }
  0xc7   : > { %4391 = vmatmul.mubr.msk.bf16.gmra.mrb[28].mxu0 %vm427_vm2, %v2557_v24  ;;  %v2863_v24 = vor.u32 %v2862_v51, %v2859_v61  ;;  %v2890_v39 = vor.u32 %v2889_v23, %v2886_v45  ;;  %v2895_v61 = vrot.slane %v2893_v41, 2  ;;  %v2898_v51 = vrot.slane %v2896_v32, 3 }
  0xc8   : > { %4394 = vmatprep.mubr.msk.bf16.mxu0 %vm427_vm2, %v2559_v54  ;;  %v912_v54 = vsel %vm885_vm5, %v909_v19, %v911_v16  ;;  %v2905_v19 = vshll.u32 %v5329_v1, 16  ;;  %v2904_v17 = vrot.slane %v2902_v29, 2  ;;  %v2925_v23 = vrot.slane %v2923_v11, 3  ;;  %v4848_v29 = vld [vmem:[%s4915_s22 + $0x18] sm:$0xff]  }
  0xc9   : > { %v2864_v42 = vsel %vm2838_vm6, %v2854_v44, %v2863_v24  ;;  %v2881_v44 = vor.u32 %v2880_v18, %v2877_v37  ;;  %v2916_v37 = vrot.slane %v2914_v34, 3  ;;  %v1325_v18 = vrot.slane %v4946_v20, 1 }
  0xca   : > { %v2929_v32 = vshrl.u32 %v5361_v47, 16  ;;  %v2932_v20 = vshll.u32 %v5361_v47, 16  ;;  %v2950_v34 = vshll.u32 %v5381_v5, 16  ;;  %v2959_v11 = vshll.u32 %v5390_v21, 16 }
  0xcb   : > { %v2882_v16 = vsel %vm2838_vm6, %v2872_v49, %v2881_v44  ;;  %v2891_v9 = vsel %vm2838_vm6, %v2881_v44, %v2890_v39 }
  0xcc   : > { %4227 = vmatmul.mubr.msk.bf16.gmra.mrb[16].mxu1 %vm427_vm2, %v906_v10  ;;  %v915_v10 = vrot.slane %v5119_v40, 1 }
  0xcd   : > { %4230 = vmatprep.mubr.msk.bf16.mxu1 %vm427_vm2, %v908_v25  ;;  %v2873_v25 = vsel %vm2838_vm6, %v2863_v24, %v2872_v49 }
  0xce   : > { %v916_v40 = vsel %vm885_vm5, %v913_v30, %v915_v10  ;;  %v921_v30 = vrot.slane %v5164_v27, 1 }
  0xcf   : > { %4395 = vmatmul.mubr.msk.bf16.gmra.mrb[32].mxu0 %vm427_vm2, %v2561_v33  ;;  %v917_v33 = vrot.slane %v5134_v56, 1 }
  0xd0   : > { %4400 = vmatprep.mubr.msk.bf16.mxu0 %vm427_vm2, %v2855_v63  ;;  %v919_v63 = vrot.slane %v5141_v4, 1  ;;  %v2920_v4 = vshrl.u32 %v5348_v8, 16 }
  0xd1   : > { %v918_v24 = vsel %vm885_vm5, %v915_v10, %v917_v33  ;;  %v4847_v10 = vld [vmem:[%s4915_s22 + $0x10] sm:$0xff]  }
  0xd2   : > { %v920_v56 = vsel %vm885_vm5, %v917_v33, %v919_v63  ;;  %v2922_v45 = vrot.slane %v2920_v4, 2  ;;  %v2956_v4 = vshrl.u32 %v5390_v21, 16 }
  0xd4   : > { %4231 = vmatmul.mubr.msk.bf16.gmra.mrb[20].mxu1 %vm427_vm2, %v910_v48  ;;  %v2907_v48 = vrot.slane %v2905_v19, 3  ;;  %v2926_v44 = vor.u32 %v2925_v23, %v2922_v45  ;;  %v1328_v19 = vrot.slane %v4848_v29, 1  ;;  %v2958_v45 = vrot.slane %v2956_v4, 2 }
  0xd5   : > { %4234 = vmatprep.mubr.msk.bf16.mxu1 %vm427_vm2, %v912_v54  ;;  %v2899_v54 = vor.u32 %v2898_v51, %v2895_v61  ;;  %v2931_v61 = vrot.slane %v2929_v32, 2  ;;  %v2934_v51 = vrot.slane %v2932_v20, 3  ;;  %v2961_v23 = vrot.slane %v2959_v11, 3  ;;  %v4854_v11 = vld [vmem:[%s4915_s22 + $0x48] sm:$0xff]  }
  0xd6   : > { %v2908_v49 = vor.u32 %v2907_v48, %v2904_v17  ;;  %v2968_v32 = vshll.u32 %v5403_v36, 16  ;;  %v2995_v4 = vshll.u32 %v5425_v14, 16 }
  0xd7   : > { %4401 = vmatmul.mubr.msk.bf16.vlgmr.msra.gmra.mrb[0].mxu0 %vm427_vm2, %v2864_v42  ;;  %v2900_v6 = vsel %vm2838_vm6, %v2890_v39, %v2899_v54  ;;  %v2913_v42 = vrot.slane %v2911_v58, 2  ;;  %v2941_v39 = vshll.u32 %v5366_v52, 16  ;;  %v2947_v58 = vshrl.u32 %v5381_v5, 16 }
  0xd8   : > { %4437 = vmatpush3.bf16.msra.mxu0 %v3378_v0  ;;  %4404 = vmatprep.mubr.msk.bf16.mxu0 %vm427_vm2, %v2873_v25  ;;  %v1326_v0 = vrot.slane %v4847_v10, 1  ;;  %v2909_v25 = vsel %vm2838_vm6, %v2899_v54, %v2908_v49  ;;  %v2935_v54 = vor.u32 %v2934_v51, %v2931_v61  ;;  %v4851_v10 = vld [vmem:[%s4915_s22 + $0x30] sm:$0xff]   ;;  %v2962_v20 = vor.u32 %v2961_v23, %v2958_v45  ;;  %v4853_v51 = vld [vmem:[%s4915_s22 + $0x40] sm:$0xff]  }
  0xd9   : > { %v2917_v41 = vor.u32 %v2916_v37, %v2913_v42  ;;  %v2943_v48 = vrot.slane %v2941_v39, 3  ;;  %v2949_v37 = vrot.slane %v2947_v58, 2  ;;  %v4852_v39 = vld [vmem:[%s4915_s22 + $0x38] sm:$0xff]   ;;  %v2970_v61 = vrot.slane %v2968_v32, 3 }
  0xda   : > { %v1327_v27 = vsel %vm885_vm5, %v1325_v18, %v1326_v0  ;;  %v2936_v42 = vsel %vm2838_vm6, %v2926_v44, %v2935_v54  ;;  %v2952_v18 = vrot.slane %v2950_v34, 3  ;;  %v1336_v29 = vrot.slane %v4852_v39, 1 }
  0xdb   : > { %v2918_v33 = vsel %vm2838_vm6, %v2908_v49, %v2917_v41  ;;  %v2986_v58 = vshll.u32 %v5421_v62, 16  ;;  %v2997_v23 = vrot.slane %v2995_v4, 3  ;;  %v3291_v4 = vrot.slane %v5288_v50, 3 }
  0xdc   : > { %4235 = vmatmul.mubr.msk.bf16.gmra.mrb[24].mxu1 %vm427_vm2, %v914_v35  ;;  %v922_v35 = vsel %vm885_vm5, %v919_v63, %v921_v30  ;;  %v3293_v50 = vrot.slane %v5300_v53, 3 }
  0xdd   : > { %4238 = vmatprep.mubr.msk.bf16.mxu1 %vm427_vm2, %v916_v40  ;;  %v2938_v40 = vshrl.u32 %v5366_v52, 16 }
  0xdf   : > { %4405 = vmatmul.mubr.msk.bf16.gmra.mrb[4].mxu0 %vm427_vm2, %v2882_v16  ;;  %v4849_v16 = vld [vmem:[%s4915_s22 + $0x20] sm:$0xff]   ;;  %v2940_v17 = vrot.slane %v2938_v40, 2  ;;  %v2977_v40 = vshll.u32 %v5408_v43, 16 }
  0xe0   : > { %4408 = vmatprep.mubr.msk.bf16.mxu0 %vm427_vm2, %v2891_v9  ;;  %v1330_v63 = vrot.slane %v4849_v16, 1  ;;  %v2927_v9 = vsel %vm2838_vm6, %v2917_v41, %v2926_v44  ;;  %v2953_v41 = vor.u32 %v2952_v18, %v2949_v37  ;;  %v2974_v44 = vshrl.u32 %v5408_v43, 16  ;;  %v4855_v18 = vld [vmem:[%s4915_s22 + $0x50] sm:$0xff]  }
  0xe1   : > { %v2944_v49 = vor.u32 %v2943_v48, %v2940_v17  ;;  %v1338_v16 = vrot.slane %v4853_v51, 1  ;;  %v2979_v17 = vrot.slane %v2977_v40, 3  ;;  %v2988_v37 = vrot.slane %v2986_v58, 3  ;;  %v4856_v40 = vld [vmem:[%s4915_s22 + $0x58] sm:$0xff]  }
  0xe2   : > { %v1344_v39 = vrot.slane %v4856_v40, 1  ;;  %v1747_v40 = vshrl.u32 %v5210_v57, 16 }
  0xe4   : > { %4239 = vmatmul.mubr.msk.bf16.gmra.mrb[28].mxu1 %vm427_vm2, %v918_v24  ;;  %v1329_v24 = vsel %vm885_vm5, %v1326_v0, %v1328_v19  ;;  %v1334_v0 = vrot.slane %v4851_v10, 1  ;;  %v1342_v10 = vrot.slane %v4855_v18, 1  ;;  %v3295_v18 = vrot.slane %v5306_v28, 3 }
  0xe5   : > { %4242 = vmatprep.mubr.msk.bf16.mxu1 %vm427_vm2, %v920_v56  ;;  %v1331_v56 = vsel %vm885_vm5, %v1328_v19, %v1330_v63  ;;  %v2954_v19 = vsel %vm2838_vm6, %v2944_v49, %v2953_v41 }
  0xe6   : > { %v1337_v48 = vsel %vm885_vm5, %v1334_v0, %v1336_v29  ;;  %v3296_v53 = vsel %vm3285_vm7, %v3293_v50, %v3295_v18 }
  0xe7   : > { %4409 = vmatmul.mubr.msk.bf16.gmra.mrb[8].mxu0 %vm427_vm2, %v2900_v6  ;;  %v4850_v6 = vld [vmem:[%s4915_s22 + $0x28] sm:$0xff]  }
  0xe8   : > { %4412 = vmatprep.mubr.msk.bf16.mxu0 %vm427_vm2, %v2909_v25  ;;  %v1332_v30 = vrot.slane %v4850_v6, 1  ;;  %v2945_v25 = vsel %vm2838_vm6, %v2935_v54, %v2944_v49  ;;  %v1339_v54 = vsel %vm885_vm5, %v1336_v29, %v1338_v16  ;;  %v2992_v49 = vshrl.u32 %v5425_v14, 16 }
  0xe9   : > { %v1340_v6 = vrot.slane %v4854_v11, 1  ;;  %v1352_v11 = vrot.slane %v5228_v7, 1 }
  0xea   : > { %v2994_v45 = vrot.slane %v2992_v49, 2 }
  0xec   : > { %4243 = vmatmul.mubr.msk.bf16.gmra.mrb[32].mxu1 %vm427_vm2, %v922_v35  ;;  %v1333_v35 = vsel %vm885_vm5, %v1330_v63, %v1332_v30  ;;  %v2963_v63 = vsel %vm2838_vm6, %v2953_v41, %v2962_v20 }
  0xed   : > { %4248 = vmatprep.mubr.msk.bf16.mxu1 %vm427_vm2, %v1327_v27  ;;  %v2965_v27 = vshrl.u32 %v5403_v36, 16 }
  0xef   : > { %4413 = vmatmul.mubr.msk.bf16.gmra.mrb[12].mxu0 %vm427_vm2, %v2918_v33  ;;  %v2967_v33 = vrot.slane %v2965_v27, 2 }
  0xf0   : > { %4416 = vmatprep.mubr.msk.bf16.mxu0 %vm427_vm2, %v2927_v9  ;;  %v2976_v9 = vrot.slane %v2974_v44, 2  ;;  %v3279_v44 = vld [vmem:[%s4915_s22 + $0x10] sm:$0x8] }
  0xf2   : > { %v2980_v34 = vor.u32 %v2979_v17, %v2976_v9 }
  0xf4   : > { %4249 = vmatmul.mubr.msk.bf16.vlgmr.msra.gmra.mrb[0].mxu1 %vm427_vm2, %v1329_v24  ;;  %v2971_v24 = vor.u32 %v2970_v61, %v2967_v33  ;;  %v1346_v61 = vrot.slane %v5191_v55, 1 }
  0xf5   : > { %4252 = vmatprep.mubr.msk.bf16.mxu1 %vm427_vm2, %v1331_v56  ;;  %4475 = vmatpush3.bf16.msra.mxu1 %v4897_v2  ;;  %v1335_v2 = vsel %vm885_vm5, %v1332_v30, %v1334_v0  ;;  %v2983_v56 = vshrl.u32 %v5421_v62, 16  ;;  %v5561_v0 = vld [vmem:[%s4915_s22 + $0xa0] ss:$0 sps:$4 sm:$0x77]  }
  0xf6   : > { %v2972_v30 = vsel %vm2838_vm6, %v2962_v20, %v2971_v24  ;;  %v3001_v27 = vshrl.u32 %v5561_v0, 16  ;;  %v3004_v32 = vshll.u32 %v5561_v0, 16  ;;  %v2998_v20 = vor.u32 %v2997_v23, %v2994_v45 }
  0xf7   : > { %4417 = vmatmul.mubr.msk.bf16.gmra.mrb[16].mxu0 %vm427_vm2, %v2936_v42  ;;  %v2985_v42 = vrot.slane %v2983_v56, 2  ;;  %v1347_v17 = vsel %vm885_vm5, %v1344_v39, %v1346_v61  ;;  %v1350_v56 = vrot.slane %v5216_v60, 1  ;;  %v1358_v45 = vrot.slane %v5248_v26, 1 }
  0xf8   : > { %4420 = vmatprep.mubr.msk.bf16.mxu0 %vm427_vm2, %v2945_v25  ;;  %v2981_v25 = vsel %vm2838_vm6, %v2971_v24, %v2980_v34  ;;  %v3006_v33 = vrot.slane %v3004_v32, 3  ;;  %v3287_v24 = vrot.slane %v5271_v38, 3  ;;  %v3289_v38 = vrot.slane %v5284_v46, 3 }
  0xf9   : > { %v2989_v41 = vor.u32 %v2988_v37, %v2985_v42  ;;  %v1353_v46 = vsel %vm885_vm5, %v1350_v56, %v1352_v11  ;;  %v1738_v23 = vshrl.u32 %v5191_v55, 16 }
  0xfa   : > { %v3292_v42 = vsel %vm3285_vm7, %v3289_v38, %v3291_v4 }
  0xfb   : > { %v2990_v29 = vsel %vm2838_vm6, %v2980_v34, %v2989_v41  ;;  %v2999_v51 = vsel %vm2838_vm6, %v2989_v41, %v2998_v20  ;;  %v4845_v41 = vld [vmem:[%s4915_s22 + $0x98] ss:$0 sps:$4 sm:$0x11]   ;;  %v1740_v32 = vrot.slane %v1738_v23, 1 }
  0xfc   : > { %4253 = vmatmul.mubr.msk.bf16.gmra.mrb[4].mxu1 %vm427_vm2, %v1333_v35  ;;  %v1341_v35 = vsel %vm885_vm5, %v1338_v16, %v1340_v6  ;;  %v3940_v16 = vcombine.low %v3279_v44, %v5258_v31  ;;  %v3299_v44 = vrot.slane %v5329_v1, 3 }
  0xfd   : > { %4256 = vmatprep.mubr.msk.bf16.mxu1 %vm427_vm2, %v1335_v2  ;;  %v1343_v2 = vsel %vm885_vm5, %v1340_v6, %v1342_v10  ;;  %v3290_v6 = vsel %vm3285_vm7, %v3287_v24, %v3289_v38 }
  0xff   : > { %4421 = vmatmul.mubr.msk.bf16.gmra.mrb[20].mxu0 %vm427_vm2, %v2954_v19  ;;  %v3003_v19 = vrot.slane %v3001_v27, 2 }
 0x100   : > { %4424 = vmatprep.mubr.msk.bf16.mxu0 %vm427_vm2, %v2963_v63  ;;  %v1345_v63 = vsel %vm885_vm5, %v1342_v10, %v1344_v39  ;;  %v1356_v10 = vrot.slane %v5244_v22, 1  ;;  %v1750_v39 = vshll.u32 %v5210_v57, 16 }
 0x101   : > { %v3007_v9 = vor.u32 %v3006_v33, %v3003_v19  ;;  %v1759_v33 = vshll.u32 %v5216_v60, 16 }
 0x102   : > { %v1359_v27 = vsel %vm885_vm5, %v1356_v10, %v1358_v45 }
 0x103   : > { %v3008_v31 = vsel %vm2838_vm6, %v2998_v20, %v3007_v9 }
 0x104   : > { %4257 = vmatmul.mubr.msk.bf16.gmra.mrb[8].mxu1 %vm427_vm2, %v1337_v48  ;;  %v3286_v48 = vrot.slane %v3940_v16, 3  ;;  %v1752_v16 = vrot.slane %v1750_v39, 2 }
 0x105   : > { %4260 = vmatprep.mubr.msk.bf16.mxu1 %vm427_vm2, %v1339_v54  ;;  %v1348_v54 = vrot.slane %v5210_v57, 1 }
 0x106   : > { %v3288_v58 = vsel %vm3285_vm7, %v3286_v48, %v3287_v24  ;;  %v3303_v48 = vrot.slane %v5348_v8, 3  ;;  %v1765_v24 = vshrl.u32 %v5228_v7, 16 }
 0x107   : > { %4425 = vmatmul.mubr.msk.bf16.gmra.mrb[24].mxu0 %vm427_vm2, %v2972_v30  ;;  %v1349_v34 = vsel %vm885_vm5, %v1346_v61, %v1348_v54  ;;  %v1351_v49 = vsel %vm885_vm5, %v1348_v54, %v1350_v56  ;;  %v1354_v30 = vrot.slane %v5232_v12, 1  ;;  %v1768_v54 = vshll.u32 %v5228_v7, 16 }
 0x108   : > { %4428 = vmatprep.mubr.msk.bf16.mxu0 %vm427_vm2, %v2981_v25  ;;  %v3294_v25 = vsel %vm3285_vm7, %v3291_v4, %v3293_v50 }
 0x109   : > { %v1355_v37 = vsel %vm885_vm5, %v1352_v11, %v1354_v30  ;;  %v1357_v28 = vsel %vm885_vm5, %v1354_v30, %v1356_v10  ;;  %v1770_v38 = vrot.slane %v1768_v54, 2  ;;  %v1783_v30 = vshrl.u32 %v5244_v22, 16 }
 0x10b   : > { %v1785_v10 = vrot.slane %v1783_v30, 1 }
 0x10c   : > { %4261 = vmatmul.mubr.msk.bf16.gmra.mrb[12].mxu1 %vm427_vm2, %v1341_v35  ;;  %v1741_v35 = vshll.u32 %v5191_v55, 16  ;;  %v1360_v55 = vrot.slane %v4845_v41, 1  ;;  %v1804_v41 = vshll.u32 %v5264_v59, 16 }
 0x10d   : > { %4264 = vmatprep.mubr.msk.bf16.mxu1 %vm427_vm2, %v1343_v2  ;;  %v3297_v2 = vrot.slane %v5325_v3, 3  ;;  %v1756_v3 = vshrl.u32 %v5216_v60, 16 }
 0x10e   : > { %v1743_v20 = vrot.slane %v1741_v35, 2  ;;  %v1361_v1 = vsel %vm885_vm5, %v1358_v45, %v1360_v55  ;;  %v3309_v45 = vrot.slane %v5381_v5, 3 }
 0x10f   : > { %4429 = vmatmul.mubr.msk.bf16.gmra.mrb[28].mxu0 %vm427_vm2, %v2990_v29  ;;  %v3298_v29 = vsel %vm3285_vm7, %v3295_v18, %v3297_v2  ;;  %v3300_v61 = vsel %vm3285_vm7, %v3297_v2, %v3299_v44  ;;  %v1758_v9 = vrot.slane %v1756_v3, 1  ;;  %v3319_v3 = vrot.slane %v5425_v14, 3 }
 0x110   : > { %4432 = vmatprep.mubr.msk.bf16.mxu0 %vm427_vm2, %v2999_v51  ;;  %v1744_v19 = vor.u32 %v1743_v20, %v1740_v32  ;;  %v1749_v51 = vrot.slane %v1747_v40, 1  ;;  %v3315_v40 = vrot.slane %v5408_v43, 3 }
 0x112   : > { %v1745_v57 = vsel %vm1638_vm3, %v5105_v15, %v1744_v19  ;;  %v1753_v60 = vor.u32 %v1752_v16, %v1749_v51  ;;  %v1777_v15 = vshll.u32 %v5232_v12, 16 }
 0x114   : > { %4265 = vmatmul.mubr.msk.bf16.gmra.mrb[16].mxu1 %vm427_vm2, %v1345_v63  ;;  %v3301_v63 = vrot.slane %v5343_v13, 3  ;;  %v1774_v13 = vshrl.u32 %v5232_v12, 16  ;;  %v1754_v8 = vsel %vm1638_vm3, %v1744_v19, %v1753_v60  ;;  %v1779_v11 = vrot.slane %v1777_v15, 2 }
 0x115   : > { %4268 = vmatprep.mubr.msk.bf16.mxu1 %vm427_vm2, %v1347_v17  ;;  %v1761_v17 = vrot.slane %v1759_v33, 2 }
 0x116   : > { %v1776_v4 = vrot.slane %v1774_v13, 1 }
 0x117   : > { %4433 = vmatmul.mubr.msk.bf16.gmra.mrb[32].mxu0 %vm427_vm2, %v3008_v31  ;;  %v3302_v31 = vsel %vm3285_vm7, %v3299_v44, %v3301_v63  ;;  %v1762_v56 = vor.u32 %v1761_v17, %v1758_v9  ;;  %v3313_v44 = vrot.slane %v5403_v36, 3  ;;  %v3317_v36 = vrot.slane %v5421_v62, 3 }
 0x118   : > { %4438 = vmatprep.mubr.msk.bf16.mxu0 %vm427_vm2, %v3288_v58  ;;  %v3304_v58 = vsel %vm3285_vm7, %v3301_v63, %v3303_v48  ;;  %v1780_v50 = vor.u32 %v1779_v11, %v1776_v4 }
 0x119   : > { %v1763_v7 = vsel %vm1638_vm3, %v1753_v60, %v1762_v56  ;;  %v3318_v43 = vsel %vm3285_vm7, %v3315_v40, %v3317_v36  ;;  %v3320_v33 = vsel %vm3285_vm7, %v3317_v36, %v3319_v3 }
 0x11c   : > { %4269 = vmatmul.mubr.msk.bf16.gmra.mrb[20].mxu1 %vm427_vm2, %v1349_v34  ;;  %v1767_v34 = vrot.slane %v1765_v24, 1 }
 0x11d   : > { %4272 = vmatprep.mubr.msk.bf16.mxu1 %vm427_vm2, %v1351_v49  ;;  %v3305_v49 = vrot.slane %v5361_v47, 3  ;;  %v1792_v47 = vshrl.u32 %v5248_v26, 16 }
 0x11e   : > { %v1771_v12 = vor.u32 %v1770_v38, %v1767_v34 }
 0x11f   : > { %4439 = vmatmul.mubr.msk.bf16.vlgmr.msra.gmra.mrb[0].mxu0 %vm427_vm2, %v3290_v6  ;;  %v3307_v6 = vrot.slane %v5366_v52, 3  ;;  %v1794_v23 = vrot.slane %v1792_v47, 1 }
 0x120   : > { %4442 = vmatprep.mubr.msk.bf16.mxu0 %vm427_vm2, %v3292_v42  ;;  %v1786_v42 = vshll.u32 %v5244_v22, 16  ;;  %v1772_v52 = vsel %vm1638_vm3, %v1762_v56, %v1771_v12  ;;  %v1781_v22 = vsel %vm1638_vm3, %v1771_v12, %v1780_v50 }
 0x121   : > { %v3308_v18 = vsel %vm3285_vm7, %v3305_v49, %v3307_v6  ;;  %v3310_v2 = vsel %vm3285_vm7, %v3307_v6, %v3309_v45 }
 0x124   : > { %4273 = vmatmul.mubr.msk.bf16.gmra.mrb[24].mxu1 %vm427_vm2, %v1353_v46  ;;  %v3306_v46 = vsel %vm3285_vm7, %v3303_v48, %v3305_v49 }
 0x125   : > { %4276 = vmatprep.mubr.msk.bf16.mxu1 %vm427_vm2, %v1355_v37  ;;  %v1795_v37 = vshll.u32 %v5248_v26, 16 }
 0x127   : > { %4443 = vmatmul.mubr.msk.bf16.gmra.mrb[4].mxu0 %vm427_vm2, %v3294_v25  ;;  %v1788_v25 = vrot.slane %v1786_v42, 2  ;;  %v1797_v35 = vrot.slane %v1795_v37, 2 }
 0x128   : > { %4446 = vmatprep.mubr.msk.bf16.mxu0 %vm427_vm2, %v3296_v53  ;;  %v3311_v53 = vrot.slane %v5390_v21, 3  ;;  %v1806_v21 = vrot.slane %v1804_v41, 2 }
 0x129   : > { %v1789_v26 = vor.u32 %v1788_v25, %v1785_v10 }
 0x12a   : > { %v3312_v5 = vsel %vm3285_vm7, %v3309_v45, %v3311_v53  ;;  %v3314_v39 = vsel %vm3285_vm7, %v3311_v53, %v3313_v44 }
 0x12b   : > { %v1790_v32 = vsel %vm1638_vm3, %v1780_v50, %v1789_v26 }
 0x12c   : > { %4277 = vmatmul.mubr.msk.bf16.gmra.mrb[28].mxu1 %vm427_vm2, %v1357_v28  ;;  %v1801_v28 = vshrl.u32 %v5264_v59, 16 }
 0x12d   : > { %4280 = vmatprep.mubr.msk.bf16.mxu1 %vm427_vm2, %v1359_v27  ;;  %v1798_v27 = vor.u32 %v1797_v35, %v1794_v23 }
 0x12e   : > { %v1803_v20 = vrot.slane %v1801_v28, 1 }
 0x12f   : > { %4447 = vmatmul.mubr.msk.bf16.gmra.mrb[8].mxu0 %vm427_vm2, %v3298_v29  ;;  %v1799_v55 = vsel %vm1638_vm3, %v1789_v26, %v1798_v27  ;;  %v3316_v29 = vsel %vm3285_vm7, %v3313_v44, %v3315_v40 }
 0x130   : > { %4450 = vmatprep.mubr.msk.bf16.mxu0 %vm427_vm2, %v3300_v61  ;;  %v1807_v59 = vor.u32 %v1806_v21, %v1803_v20  ;;  %v3321_v61 = vrot.slane %v5561_v0, 3 }
 0x132   : > { %v1808_v19 = vsel %vm1638_vm3, %v1798_v27, %v1807_v59 }
 0x134   : > { %4281 = vmatmul.mubr.msk.bf16.gmra.mrb[32].mxu1 %vm427_vm2, %v1361_v1  ;;  %v3322_v1 = vsel %vm3285_vm7, %v3319_v3, %v3321_v61 }
 0x135   : > { %4306 = vmatprep.mubr.msk.bf16.mxu1 %vm427_vm2, %v1745_v57 }
 0x137   : > { %4451 = vmatmul.mubr.msk.bf16.gmra.mrb[12].mxu0 %vm427_vm2, %v3302_v31 }
 0x138   : > { %4454 = vmatprep.mubr.msk.bf16.mxu0 %vm427_vm2, %v3304_v58 }
 0x13c   : > { %4307 = vmatmul.mubr.msk.bf16.vlgmr.msra.gmra.mrb[20].mxu1 %vm427_vm2, %v1754_v8 }
 0x13d   : > { %4310 = vmatprep.mubr.msk.bf16.mxu1 %vm427_vm2, %v1763_v7 }
 0x13f   : > { %4455 = vmatmul.mubr.msk.bf16.gmra.mrb[16].mxu0 %vm427_vm2, %v3306_v46 }
 0x140   : > { %4458 = vmatprep.mubr.msk.bf16.mxu0 %vm427_vm2, %v3308_v18 }
 0x144   : > { %4311 = vmatmul.mubr.msk.bf16.gmra.mrb[24].mxu1 %vm427_vm2, %v1772_v52 }
 0x145   : > { %4314 = vmatprep.mubr.msk.bf16.mxu1 %vm427_vm2, %v1781_v22 }
 0x147   : > { %4459 = vmatmul.mubr.msk.bf16.gmra.mrb[20].mxu0 %vm427_vm2, %v3310_v2 }
 0x148   : > { %4462 = vmatprep.mubr.msk.bf16.mxu0 %vm427_vm2, %v3312_v5 }
 0x14c   : > { %4315 = vmatmul.mubr.msk.bf16.gmra.mrb[28].mxu1 %vm427_vm2, %v1790_v32 }
 0x14d   : > { %4318 = vmatprep.mubr.msk.bf16.mxu1 %vm427_vm2, %v1799_v55 }
 0x14f   : > { %4463 = vmatmul.mubr.msk.bf16.gmra.mrb[24].mxu0 %vm427_vm2, %v3314_v39 }
 0x150   : > { %4466 = vmatprep.mubr.msk.bf16.mxu0 %vm427_vm2, %v3316_v29 }
 0x154   : > { %4319 = vmatmul.mubr.msk.bf16.gmra.mrb[32].mxu1 %vm427_vm2, %v1808_v19 }
 0x157   : > { %4467 = vmatmul.mubr.msk.bf16.gmra.mrb[28].mxu0 %vm427_vm2, %v3318_v43 }
 0x158   : > { %4470 = vmatprep.mubr.msk.bf16.mxu0 %vm427_vm2, %v3320_v33 }
 0x15f   : > { %4471 = vmatmul.mubr.msk.bf16.gmra.mrb[32].mxu0 %vm427_vm2, %v3322_v1 }
 0x1c7   : > { %v4250_v51 = vpop.f32.mrb[0].mxu1 }
 0x1c8   : > { %v1453_v62 = vpop.f32.mrb[1].mxu1 }
 0x1c9   : > { %v4251_v16 = vpop.f32.mrb[2].mxu1 }
 0x1ca   : > { %v1456_v14 = vpop.f32.mrb[3].mxu1 }
 0x1cf   : > { %v4254_v63 = vpop.f32.mrb[4].mxu1 }
 0x1d0   : > { %v1469_v57 = vpop.f32.mrb[5].mxu1 }
 0x1d1   : > { %v4255_v9 = vpop.f32.mrb[6].mxu1 }
 0x1d2   : > { %v1472_v17 = vpop.f32.mrb[7].mxu1 }
 0x1d7   : > { %v4258_v48 = vpop.f32.mrb[8].mxu1 }
 0x1d8   : > { %v1485_v60 = vpop.f32.mrb[9].mxu1 }
 0x1d9   : > { %v4259_v24 = vpop.f32.mrb[10].mxu1 }
 0x1da   : > { %v1488_v54 = vpop.f32.mrb[11].mxu1 }
 0x1df   : > { %v4262_v31 = vpop.f32.mrb[12].mxu1 }
 0x1e0   : > { %v1501_v56 = vpop.f32.mrb[13].mxu1 }
 0x1e1   : > { %v4263_v0 = vpop.f32.mrb[14].mxu1 }
 0x1e2   : > { %v5694_v13 = vpop.f32.mrb[15].mxu1 }
 0x1e7   : > { %v5696_v15 = vpop.f32.mrb[16].mxu1 }
 0x1e8   : > { %v5698_v58 = vpop.f32.mrb[17].mxu1 }
 0x1e9   : > { %v5700_v8 = vpop.f32.mrb[18].mxu1 }
 0x1ea   : > { %v5702_v34 = vpop.f32.mrb[19].mxu1 }
 0x1f2   : > { %v4440_v38 = vpop.f32.mrb[0].mxu0 }
 0x1f3   : > { %v4476_v49 = vadd.f32 %v4440_v38, %v4250_v51  ;;  %v3414_v7 = vpop.f32.mrb[1].mxu0 }
 0x1f4   : > { %v4477_v4 = vadd.f32 %v3414_v7, %v1453_v62  ;;  %v4441_v11 = vpop.f32.mrb[2].mxu0 }
 0x1f5   : > { %v3595_v6 = vmax.f32 %v4476_v49, 0.0  ;;  %v4478_v12 = vadd.f32 %v4441_v11, %v4251_v16  ;;  %v3417_v30 = vpop.f32.mrb[3].mxu0 }
 0x1f6   : > { %v3593_v42 = vmax.f32 %v4477_v4, 0.0  ;;  %v4479_v46 = vadd.f32 %v3417_v30, %v1456_v14 }
 0x1f7   : > { %3631 = vst [vmem:[%s5708_s12 + $0x10] sm:$0xff] %v3595_v6  ;;  %v3596_v50 = vmax.f32 %v4478_v12, 0.0 }
 0x1f8   : > { %3629 = vst [vmem:[%s5708_s12] sm:$0xff] %v3593_v42  ;;  %v3594_v47 = vmax.f32 %v4479_v46, 0.0 }
 0x1f9   : > { %3632 = vst [vmem:[%s5708_s12 + $0x18] sm:$0xff] %v3596_v50 }
 0x1fa   : > { %3630 = vst [vmem:[%s5708_s12 + $0x8] sm:$0xff] %v3594_v47  ;;  %v4444_v37 = vpop.f32.mrb[4].mxu0 }
 0x1fb   : > { %v4480_v18 = vadd.f32 %v4444_v37, %v4254_v63  ;;  %v3430_v52 = vpop.f32.mrb[5].mxu0 }
 0x1fc   : > { %v4481_v10 = vadd.f32 %v3430_v52, %v1469_v57  ;;  %v4445_v25 = vpop.f32.mrb[6].mxu0 }
 0x1fd   : > { %v3599_v45 = vmax.f32 %v4480_v18, 0.0  ;;  %v4482_v22 = vadd.f32 %v4445_v25, %v4255_v9  ;;  %v3433_v23 = vpop.f32.mrb[7].mxu0 }
 0x1fe   : > { %v3597_v35 = vmax.f32 %v4481_v10, 0.0  ;;  %v4483_v53 = vadd.f32 %v3433_v23, %v1472_v17 }
 0x1ff   : > { %3635 = vst [vmem:[%s5708_s12 + $0x30] sm:$0xff] %v3599_v45  ;;  %v3600_v26 = vmax.f32 %v4482_v22, 0.0 }
 0x200   : > { %3633 = vst [vmem:[%s5708_s12 + $0x20] sm:$0xff] %v3597_v35  ;;  %v3598_v28 = vmax.f32 %v4483_v53, 0.0 }
 0x201   : > { %3636 = vst [vmem:[%s5708_s12 + $0x38] sm:$0xff] %v3600_v26 }
 0x202   : > { %3634 = vst [vmem:[%s5708_s12 + $0x28] sm:$0xff] %v3598_v28  ;;  %v4448_v41 = vpop.f32.mrb[8].mxu0 }
 0x203   : > { %v4484_v2 = vadd.f32 %v4448_v41, %v4258_v48  ;;  %v3446_v27 = vpop.f32.mrb[9].mxu0 }
 0x204   : > { %v4485_v5 = vadd.f32 %v3446_v27, %v1485_v60  ;;  %v4449_v32 = vpop.f32.mrb[10].mxu0 }
 0x205   : > { %v3603_v20 = vmax.f32 %v4484_v2, 0.0  ;;  %v4486_v21 = vadd.f32 %v4449_v32, %v4259_v24  ;;  %v3449_v44 = vpop.f32.mrb[11].mxu0 }
 0x206   : > { %v3601_v55 = vmax.f32 %v4485_v5, 0.0  ;;  %v4487_v40 = vadd.f32 %v3449_v44, %v1488_v54 }
 0x207   : > { %3639 = vst [vmem:[%s5708_s12 + $0x50] sm:$0xff] %v3603_v20  ;;  %v3604_v59 = vmax.f32 %v4486_v21, 0.0 }
 0x208   : > { %3637 = vst [vmem:[%s5708_s12 + $0x40] sm:$0xff] %v3601_v55  ;;  %v3602_v39 = vmax.f32 %v4487_v40, 0.0 }
 0x209   : > { %3640 = vst [vmem:[%s5708_s12 + $0x58] sm:$0xff] %v3604_v59 }
 0x20a   : > { %3638 = vst [vmem:[%s5708_s12 + $0x48] sm:$0xff] %v3602_v39  ;;  %v4452_v29 = vpop.f32.mrb[12].mxu0 }
 0x20b   : > { %v4488_v19 = vadd.f32 %v4452_v29, %v4262_v31  ;;  %v3462_v36 = vpop.f32.mrb[13].mxu0 }
 0x20c   : > { %v4489_v3 = vadd.f32 %v3462_v36, %v1501_v56  ;;  %v4453_v43 = vpop.f32.mrb[14].mxu0 }
 0x20d   : > { %v3607_v33 = vmax.f32 %v4488_v19, 0.0  ;;  %v4490_v61 = vadd.f32 %v4453_v43, %v4263_v0  ;;  %v3465_v1 = vpop.f32.mrb[15].mxu0 }
 0x20e   : > { %v3605_v62 = vmax.f32 %v4489_v3, 0.0  ;;  %v4491_v16 = vadd.f32 %v3465_v1, %v5694_v13 }
 0x20f   : > { %v4308_v51 = vpop.f32.mrb[20].mxu1  ;;  %3643 = vst [vmem:[%s5708_s12 + $0x70] sm:$0xff] %v3607_v33  ;;  %v3608_v63 = vmax.f32 %v4490_v61, 0.0 }
 0x210   : > { %v1980_v14 = vpop.f32.mrb[21].mxu1  ;;  %3641 = vst [vmem:[%s5708_s12 + $0x60] sm:$0xff] %v3605_v62  ;;  %v3606_v9 = vmax.f32 %v4491_v16, 0.0 }
 0x211   : > { %v4309_v57 = vpop.f32.mrb[22].mxu1  ;;  %3644 = vst [vmem:[%s5708_s12 + $0x78] sm:$0xff] %v3608_v63 }
 0x212   : > { %v1983_v17 = vpop.f32.mrb[23].mxu1  ;;  %3642 = vst [vmem:[%s5708_s12 + $0x68] sm:$0xff] %v3606_v9  ;;  %v4456_v48 = vpop.f32.mrb[16].mxu0 }
 0x213   : > { %v4492_v60 = vadd.f32 %v4456_v48, %v5696_v15  ;;  %v3478_v24 = vpop.f32.mrb[17].mxu0 }
 0x214   : > { %v4493_v54 = vadd.f32 %v3478_v24, %v5698_v58  ;;  %v4457_v31 = vpop.f32.mrb[18].mxu0 }
 0x215   : > { %v3611_v56 = vmax.f32 %v4492_v60, 0.0  ;;  %v4494_v0 = vadd.f32 %v4457_v31, %v5700_v8  ;;  %v3481_v13 = vpop.f32.mrb[19].mxu0 }
 0x216   : > { %v3609_v49 = vmax.f32 %v4493_v54, 0.0  ;;  %v4495_v7 = vadd.f32 %v3481_v13, %v5702_v34 }
 0x217   : > { %v4312_v38 = vpop.f32.mrb[24].mxu1  ;;  %3647 = vst [vmem:[%s5708_s12 + $0x90] sm:$0xff] %v3611_v56  ;;  %v3612_v11 = vmax.f32 %v4494_v0, 0.0 }
 0x218   : > { %v1996_v4 = vpop.f32.mrb[25].mxu1  ;;  %3645 = vst [vmem:[%s5708_s12 + $0x80] sm:$0xff] %v3609_v49  ;;  %v3610_v15 = vmax.f32 %v4495_v7, 0.0 }
 0x219   : > { %v4313_v6 = vpop.f32.mrb[26].mxu1  ;;  %3648 = vst [vmem:[%s5708_s12 + $0x98] sm:$0xff] %v3612_v11 }
 0x21a   : > { %v1999_v12 = vpop.f32.mrb[27].mxu1  ;;  %3646 = vst [vmem:[%s5708_s12 + $0x88] sm:$0xff] %v3610_v15  ;;  %v4460_v58 = vpop.f32.mrb[20].mxu0 }
 0x21b   : > { %v4496_v30 = vadd.f32 %v4460_v58, %v4308_v51  ;;  %v3494_v42 = vpop.f32.mrb[21].mxu0 }
 0x21c   : > { %v4497_v8 = vadd.f32 %v3494_v42, %v1980_v14  ;;  %v4461_v46 = vpop.f32.mrb[22].mxu0 }
 0x21d   : > { %v3615_v50 = vmax.f32 %v4496_v30, 0.0  ;;  %v4498_v34 = vadd.f32 %v4461_v46, %v4309_v57  ;;  %v3497_v47 = vpop.f32.mrb[23].mxu0 }
 0x21e   : > { %v3613_v18 = vmax.f32 %v4497_v8, 0.0  ;;  %v4499_v52 = vadd.f32 %v3497_v47, %v1983_v17 }
 0x21f   : > { %v4316_v37 = vpop.f32.mrb[28].mxu1  ;;  %3651 = vst [vmem:[%s5708_s12 + $0xb0] sm:$0xff] %v3615_v50  ;;  %v3616_v25 = vmax.f32 %v4498_v34, 0.0 }
 0x220   : > { %v2012_v10 = vpop.f32.mrb[29].mxu1  ;;  %3649 = vst [vmem:[%s5708_s12 + $0xa0] sm:$0xff] %v3613_v18  ;;  %v3614_v22 = vmax.f32 %v4499_v52, 0.0 }
 0x221   : > { %v4317_v45 = vpop.f32.mrb[30].mxu1  ;;  %3652 = vst [vmem:[%s5708_s12 + $0xb8] sm:$0xff] %v3616_v25 }
 0x222   : > { %v2015_v23 = vpop.f32.mrb[31].mxu1  ;;  %3650 = vst [vmem:[%s5708_s12 + $0xa8] sm:$0xff] %v3614_v22  ;;  %v4464_v35 = vpop.f32.mrb[24].mxu0 }
 0x223   : > { %v4500_v53 = vadd.f32 %v4464_v35, %v4312_v38  ;;  %v3510_v26 = vpop.f32.mrb[25].mxu0 }
 0x224   : > { %v4501_v28 = vadd.f32 %v3510_v26, %v1996_v4  ;;  %v4465_v41 = vpop.f32.mrb[26].mxu0 }
 0x225   : > { %v3619_v2 = vmax.f32 %v4500_v53, 0.0  ;;  %v4502_v27 = vadd.f32 %v4465_v41, %v4313_v6  ;;  %v3513_v5 = vpop.f32.mrb[27].mxu0 }
 0x226   : > { %v3617_v20 = vmax.f32 %v4501_v28, 0.0  ;;  %v4503_v21 = vadd.f32 %v3513_v5, %v1999_v12 }
 0x227   : > { %v4320_v32 = vpop.f32.mrb[32].mxu1  ;;  %3655 = vst [vmem:[%s5708_s12 + $0xd0] sm:$0xff] %v3619_v2  ;;  %v3620_v55 = vmax.f32 %v4502_v27, 0.0 }
 0x228   : > { %v2028_v44 = vpop.f32.mrb[33].mxu1  ;;  %3653 = vst [vmem:[%s5708_s12 + $0xc0] sm:$0xff] %v3617_v20  ;;  %v3618_v59 = vmax.f32 %v4503_v21, 0.0 }
 0x229   : > { %v4321_v40 = vpop.f32.mrb[34].mxu1  ;;  %3656 = vst [vmem:[%s5708_s12 + $0xd8] sm:$0xff] %v3620_v55 }
 0x22a   : > { %v2031_v39 = vpop.f32.mrb[35].mxu1  ;;  %3654 = vst [vmem:[%s5708_s12 + $0xc8] sm:$0xff] %v3618_v59  ;;  %v4468_v29 = vpop.f32.mrb[28].mxu0 }
 0x22b   : > { %v4504_v19 = vadd.f32 %v4468_v29, %v4316_v37  ;;  %v3526_v36 = vpop.f32.mrb[29].mxu0 }
 0x22c   : > { %v4505_v3 = vadd.f32 %v3526_v36, %v2012_v10  ;;  %v4469_v43 = vpop.f32.mrb[30].mxu0 }
 0x22d   : > { %v3623_v33 = vmax.f32 %v4504_v19, 0.0  ;;  %v4506_v61 = vadd.f32 %v4469_v43, %v4317_v45  ;;  %v3529_v1 = vpop.f32.mrb[31].mxu0 }
 0x22e   : > { %v3621_v51 = vmax.f32 %v4505_v3, 0.0  ;;  %v4507_v62 = vadd.f32 %v3529_v1, %v2015_v23 }
 0x22f   : > { %3659 = vst [vmem:[%s5708_s12 + $0xf0] sm:$0xff] %v3623_v33  ;;  %v3624_v16 = vmax.f32 %v4506_v61, 0.0 }
 0x230   : > { %3657 = vst [vmem:[%s5708_s12 + $0xe0] sm:$0xff] %v3621_v51  ;;  %v3622_v14 = vmax.f32 %v4507_v62, 0.0 }
 0x231   : > { %3660 = vst [vmem:[%s5708_s12 + $0xf8] sm:$0xff] %v3624_v16 }
 0x232   : > { %3658 = vst [vmem:[%s5708_s12 + $0xe8] sm:$0xff] %v3622_v14  ;;  %v4472_v63 = vpop.f32.mrb[32].mxu0 }
 0x233   : > { %v4508_v57 = vadd.f32 %v4472_v63, %v4320_v32  ;;  %v3542_v9 = vpop.f32.mrb[33].mxu0 }
 0x234   : > { %v4509_v17 = vadd.f32 %v3542_v9, %v2028_v44  ;;  %v4473_v48 = vpop.f32.mrb[34].mxu0 }
 0x235   : > { %v3627_v60 = vmax.f32 %v4508_v57, 0.0  ;;  %v4510_v24 = vadd.f32 %v4473_v48, %v4321_v40  ;;  %v3545_v54 = vpop.f32.mrb[35].mxu0 }
 0x236   : > { %v3625_v31 = vmax.f32 %v4509_v17, 0.0  ;;  %v4511_v56 = vadd.f32 %v3545_v54, %v2031_v39 }
 0x237   : > { %3663 = vst [vmem:[%s5708_s12 + $0x110] sm:$0xff] %v3627_v60  ;;  %v3628_v0 = vmax.f32 %v4510_v24, 0.0 }
 0x238   : > { %3661 = vst [vmem:[%s5708_s12 + $0x100] sm:$0xff] %v3625_v31  ;;  %v3626_v13 = vmax.f32 %v4511_v56, 0.0 }
 0x239   : > { %3664 = vst [vmem:[%s5708_s12 + $0x118] sm:$0xff] %v3628_v0 }
 0x23a   : > { %3662 = vst [vmem:[%s5708_s12 + $0x108] sm:$0xff] %v3626_v13 }
 0x23b PF: > { %s12_s9 = sadd.s32 1, %s4863_s9  }
 0x23c   : > { %p9_p4 = scmp.ge.s32.totalorder %s12_s9, 4  }
 0x23e   :  { %11 = sbr.rel (!%p9_p4) target bundleno = 1 (0x1), region = 66 }

</bundles_post_ra>
